<compile_context>
chip_gen: v5e
topology: v5e:2x2
jax: 0.10.0
libtpu: 0.0.40
codegen_flags: <defaults>
</compile_context>

<pallas_src>
import jax
import jax.numpy as jnp
from jax.experimental import pallas as pl
from jax.experimental.pallas import tpu as pltpu


def _prelu(h, a):
    # Single shared scalar slope (PyTorch nn.PReLU default); `a` comes from SMEM.
    return jnp.where(h > 0, h, a * h)


def encoder_kernel(
    alpha_ref,                         # SMEM (3,) f32: PReLU slopes for layers 1..3
    x_ref,                             # (TB, D_in_p)   bf16 VMEM
    w1_ref, b1_ref,                    # (D_in_p, 512)  bf16, (1, 512)   f32
    w2_ref, b2_ref,                    # (512, 256)     bf16, (1, 256)   f32
    w3_ref, b3_ref,                    # (256, 128)     bf16, (1, 128)   f32
    w4_ref, b4_ref,                    # (128, D_out_p) bf16, (1, D_out_p) f32
    o_ref,                             # (TB, D_out_p)  out-dtype VMEM
):
    # Layer 1: bf16 x bf16 on the MXU, f32 accumulate.
    h = jnp.dot(x_ref[...], w1_ref[...], preferred_element_type=jnp.float32)
    h = _prelu(h + b1_ref[...], alpha_ref[0])

    # Layers 2/3: re-cast activations to bf16 per layer; weights stay bf16.
    h = jnp.dot(h.astype(jnp.bfloat16), w2_ref[...],
                preferred_element_type=jnp.float32)
    h = _prelu(h + b2_ref[...], alpha_ref[1])

    h = jnp.dot(h.astype(jnp.bfloat16), w3_ref[...],
                preferred_element_type=jnp.float32)
    h = _prelu(h + b3_ref[...], alpha_ref[2])

    # Layer 4 (no activation), lane-dense store in the requested output dtype.
    h = jnp.dot(h.astype(jnp.bfloat16), w4_ref[...],
                preferred_element_type=jnp.float32)
    o_ref[...] = (h + b4_ref[...]).astype(o_ref.dtype)


def _round_up(n, m):
    return ((n + m - 1) // m) * m


def encoder_forward(x, params, *, tb=512, out_dtype=jnp.float32):
    """params: w1..w4 as [in,out] f32, b1..b4 as [1,out] f32, a1..a3 as (1,) f32."""
    B, D_in = x.shape
    D_out = params["w4"].shape[1]

    # Lane-dense padding (exact: padded columns/rows are zero).
    D_in_p = _round_up(D_in, 128)
    D_out_p = _round_up(D_out, 128)

    # Batch tile: multiple of 16 (bf16 sublane packing), no larger than the batch.
    tb = _round_up(min(tb, _round_up(B, 16)), 16)
    # Keep >= 2 grid steps when there is enough batch so v7x's 2 TensorCores both
    # get work from the "parallel" axis (no effect on v5e/v6e: still one loop).
    if B > 16:
        tb = min(tb, _round_up(-(-B // 2), 16))
    tb = max(tb, 16)
    B_p = _round_up(B, tb)
    grid = (B_p // tb,)

    out_itemsize = jnp.dtype(out_dtype).itemsize

    # bf16 MXU operands prepared once in the wrapper (not per grid step).
    x_bf16 = x.astype(jnp.bfloat16)
    if B_p == B and D_in_p == D_in:
        x_p = x_bf16                                    # aligned: no extra copy
    else:
        x_p = jnp.pad(x_bf16, ((0, B_p - B), (0, D_in_p - D_in)))

    def pad_to(a, shape):
        if tuple(a.shape) == tuple(shape):
            return a
        return jnp.pad(a, tuple((0, s - d) for d, s in zip(a.shape, shape)))

    w1 = pad_to(params["w1"].astype(jnp.bfloat16), (D_in_p, 512))
    w2 = params["w2"].astype(jnp.bfloat16)
    w3 = params["w3"].astype(jnp.bfloat16)
    w4 = pad_to(params["w4"].astype(jnp.bfloat16), (128, D_out_p))
    b1, b2, b3 = params["b1"], params["b2"], params["b3"]
    b4 = pad_to(params["b4"], (1, D_out_p))
    alphas = jnp.concatenate([params["a1"], params["a2"], params["a3"]])  # (3,)

    def resident_spec(shape):
        # Constant index_map -> grid-resident; single-buffered (no wasted VMEM).
        return pl.BlockSpec(shape, lambda i: (0, 0), pipeline_mode=pl.Buffered(1))

    # Explicit VMEM budget from the tile footprint (floor 32 MiB, cap 64 MiB so
    # the request stays valid on v7x's 64 MiB per-TC VMEM).
    weight_bytes = ((w1.size + w2.size + w3.size + w4.size) * 2
                    + (b1.size + b2.size + b3.size + b4.size) * 4)
    tile_bytes = (2 * tb * D_in_p * 2                   # x tile, double-buffered bf16
                  + 2 * tb * D_out_p * out_itemsize     # out tile, double-buffered
                  + tb * (512 + 256 + 128) * (4 + 2))   # f32 intermediates + bf16 recasts
    vmem_limit = int(min(max(2 * (weight_bytes + tile_bytes), 32 << 20), 64 << 20))

    flops = 2 * B_p * (D_in_p * 512 + 512 * 256 + 256 * 128 + 128 * D_out_p)
    bytes_accessed = x_p.size * 2 + weight_bytes + B_p * D_out_p * out_itemsize

    grid_spec = pltpu.PrefetchScalarGridSpec(
        num_scalar_prefetch=0,
        grid=grid,
        in_specs=[
            pl.BlockSpec(memory_space=pltpu.SMEM),            # alphas (3,)
            pl.BlockSpec((tb, D_in_p), lambda i: (i, 0)),     # x (per-step tile)
            resident_spec(w1.shape), resident_spec(b1.shape),
            resident_spec(w2.shape), resident_spec(b2.shape),
            resident_spec(w3.shape), resident_spec(b3.shape),
            resident_spec(w4.shape), resident_spec(b4.shape),
        ],
        out_specs=pl.BlockSpec((tb, D_out_p), lambda i: (i, 0)),
    )

    y_p = pl.pallas_call(
        encoder_kernel,
        out_shape=jax.ShapeDtypeStruct((B_p, D_out_p), out_dtype),
        grid_spec=grid_spec,
        compiler_params=pltpu.CompilerParams(
            dimension_semantics=("parallel",),
            vmem_limit_bytes=vmem_limit,
        ),
        cost_estimate=pl.CostEstimate(
            flops=flops, transcendentals=0, bytes_accessed=bytes_accessed),
    )(alphas, x_p, w1, b1, w2, b2, w3, b3, w4, b4)
    return y_p[:B, :D_out]


def init_params(key, input_size, output_size):
    dims = [(input_size, 512), (512, 256), (256, 128), (128, output_size)]
    params = {}
    keys = jax.random.split(key, 2 * len(dims))
    for idx, (d_in, d_out) in enumerate(dims):
        kw, kb = keys[2 * idx], keys[2 * idx + 1]
        bound = 1.0 / jnp.sqrt(d_in)  # kaiming-uniform-ish bound
        params[f"w{idx + 1}"] = jax.random.uniform(
            kw, (d_in, d_out), jnp.float32, -bound, bound)
        params[f"b{idx + 1}"] = jax.random.uniform(
            kb, (1, d_out), jnp.float32, -bound, bound)
    for j in range(1, 4):  # PReLU default: single shared slope 0.25
        params[f"a{j}"] = jnp.full((1,), 0.25, jnp.float32)
    return params


def reference_forward_bf16(x, params):
    """Mimics the kernel's mixed precision: bf16 operands, f32 accumulate."""
    h = x.astype(jnp.bfloat16)
    for idx in range(1, 5):
        h = jnp.dot(h, params[f"w{idx}"].astype(jnp.bfloat16),
                    preferred_element_type=jnp.float32) + params[f"b{idx}"]
        if idx < 4:
            a = params[f"a{idx}"][0]
            h = jnp.where(h > 0, h, a * h).astype(jnp.bfloat16)
    return h


def reference_forward_f32(x, params):
    h = x
    for idx in range(1, 5):
        h = h @ params[f"w{idx}"] + params[f"b{idx}"]
        if idx < 4:
            a = params[f"a{idx}"][0]
            h = jnp.where(h > 0, h, a * h)
    return h


if __name__ == "__main__":
    input_size, output_size, batch = 32, 16, 50  # exercises padding + 2-step grid

    key = jax.random.PRNGKey(0)
    kx, kp = jax.random.split(key)
    x = jax.random.normal(kx, (batch, input_size), jnp.float32)
    params = init_params(kp, input_size, output_size)

    y = jax.block_until_ready(encoder_forward(x, params))
    assert y.shape == (batch, output_size)
    assert y.dtype == jnp.float32

    # Tight check against a reference that mimics the kernel's bf16/f32 pipeline.
    y_bf16_ref = reference_forward_bf16(x, params)
    assert jnp.allclose(y, y_bf16_ref, atol=1e-3, rtol=1e-3), "mismatch vs bf16 reference"

    # Loose sanity check against pure-f32 module semantics (bf16 weight quantization).
    y_f32_ref = reference_forward_f32(x, params)
    assert jnp.allclose(y, y_f32_ref, atol=1e-1, rtol=1e-1), "mismatch vs f32 reference"

    # Optional bf16-output path (halves the output HBM stream on big batches).
    y_bf16 = jax.block_until_ready(
        encoder_forward(x, params, out_dtype=jnp.bfloat16))
    assert jnp.allclose(y_bf16.astype(jnp.float32), y, atol=5e-2, rtol=5e-2), \
        "mismatch between bf16-output and f32-output kernel paths"

    print("KERNEL_OK")
</pallas_src>

<mosaic_0001>
module attributes {stable_mosaic.version = 11 : i64} {
  func.func @encoder_kernel(%arg0: i32, %arg1: memref<3xf32, #tpu.memory_space<smem>>, %arg2: memref<32x128xbf16, #tpu.memory_space<vmem>>, %arg3: memref<128x512xbf16, #tpu.memory_space<vmem>>, %arg4: memref<1x512xf32, #tpu.memory_space<vmem>>, %arg5: memref<512x256xbf16, #tpu.memory_space<vmem>>, %arg6: memref<1x256xf32, #tpu.memory_space<vmem>>, %arg7: memref<256x128xbf16, #tpu.memory_space<vmem>>, %arg8: memref<1x128xf32, #tpu.memory_space<vmem>>, %arg9: memref<128x128xbf16, #tpu.memory_space<vmem>>, %arg10: memref<1x128xf32, #tpu.memory_space<vmem>>, %arg11: memref<32x128xf32, #tpu.memory_space<vmem>>) attributes {dimension_semantics = [#tpu.dimension_semantics<parallel>], iteration_bounds = array<i64: 2>, scalar_prefetch = 0 : i64, scratch_operands = 0 : i64, tpu.core_type = #tpu.core_type<tc>, window_params = [{transform_indices = @transform_0, window_bounds = array<i64: 3>}, {transform_indices = @transform_1, window_bounds = array<i64: 32, 128>}, {pipeline_mode = #tpu.pipeline_mode<synchronous>, transform_indices = @transform_2, window_bounds = array<i64: 128, 512>}, {pipeline_mode = #tpu.pipeline_mode<synchronous>, transform_indices = @transform_3, window_bounds = array<i64: 1, 512>}, {pipeline_mode = #tpu.pipeline_mode<synchronous>, transform_indices = @transform_4, window_bounds = array<i64: 512, 256>}, {pipeline_mode = #tpu.pipeline_mode<synchronous>, transform_indices = @transform_5, window_bounds = array<i64: 1, 256>}, {pipeline_mode = #tpu.pipeline_mode<synchronous>, transform_indices = @transform_6, window_bounds = array<i64: 256, 128>}, {pipeline_mode = #tpu.pipeline_mode<synchronous>, transform_indices = @transform_7, window_bounds = array<i64: 1, 128>}, {pipeline_mode = #tpu.pipeline_mode<synchronous>, transform_indices = @transform_8, window_bounds = array<i64: 128, 128>}, {pipeline_mode = #tpu.pipeline_mode<synchronous>, transform_indices = @transform_9, window_bounds = array<i64: 1, 128>}, {transform_indices = @transform_10, window_bounds = array<i64: 32, 128>}]} {
    %c0 = arith.constant 0 : index
    %c0_0 = arith.constant 0 : index
    %0 = vector.load %arg2[%c0, %c0_0] : memref<32x128xbf16, #tpu.memory_space<vmem>>, vector<32x128xbf16>
    %c0_1 = arith.constant 0 : index
    %c0_2 = arith.constant 0 : index
    %1 = vector.load %arg3[%c0_1, %c0_2] : memref<128x512xbf16, #tpu.memory_space<vmem>>, vector<128x512xbf16>
    %cst = arith.constant dense<0.000000e+00> : vector<32x512xf32>
    %2 = tpu.matmul %0, %1, %cst {dimension_numbers = #tpu.dot_dimension_numbers<[1], [0], [0], [1], [0, 0, 1, 1], [], []>} : vector<32x128xbf16>, vector<128x512xbf16>, vector<32x512xf32> -> vector<32x512xf32>
    %c0_3 = arith.constant 0 : index
    %c0_4 = arith.constant 0 : index
    %3 = vector.load %arg4[%c0_3, %c0_4] : memref<1x512xf32, #tpu.memory_space<vmem>>, vector<1x512xf32>
    %4 = vector.broadcast %3 : vector<1x512xf32> to vector<32x512xf32>
    %5 = arith.addf %2, %4 : vector<32x512xf32>
    %c0_5 = arith.constant 0 : index
    %6 = memref.load %arg1[%c0_5] : memref<3xf32, #tpu.memory_space<smem>>
    %cst_6 = arith.constant 0.000000e+00 : f32
    %7 = vector.broadcast %cst_6 : f32 to vector<32x512xf32>
    %8 = arith.cmpf ogt, %5, %7 : vector<32x512xf32>
    %9 = vector.broadcast %6 : f32 to vector<32x512xf32>
    %10 = arith.mulf %9, %5 : vector<32x512xf32>
    %11 = arith.select %8, %5, %10 : vector<32x512xi1>, vector<32x512xf32>
    %12 = arith.truncf %11 : vector<32x512xf32> to vector<32x512xbf16>
    %c0_7 = arith.constant 0 : index
    %c0_8 = arith.constant 0 : index
    %13 = vector.load %arg5[%c0_7, %c0_8] : memref<512x256xbf16, #tpu.memory_space<vmem>>, vector<512x256xbf16>
    %cst_9 = arith.constant dense<0.000000e+00> : vector<32x256xf32>
    %14 = tpu.matmul %12, %13, %cst_9 {dimension_numbers = #tpu.dot_dimension_numbers<[1], [0], [0], [1], [0, 0, 1, 1], [], []>} : vector<32x512xbf16>, vector<512x256xbf16>, vector<32x256xf32> -> vector<32x256xf32>
    %c0_10 = arith.constant 0 : index
    %c0_11 = arith.constant 0 : index
    %15 = vector.load %arg6[%c0_10, %c0_11] : memref<1x256xf32, #tpu.memory_space<vmem>>, vector<1x256xf32>
    %16 = vector.broadcast %15 : vector<1x256xf32> to vector<32x256xf32>
    %17 = arith.addf %14, %16 : vector<32x256xf32>
    %c1 = arith.constant 1 : index
    %18 = memref.load %arg1[%c1] : memref<3xf32, #tpu.memory_space<smem>>
    %cst_12 = arith.constant 0.000000e+00 : f32
    %19 = vector.broadcast %cst_12 : f32 to vector<32x256xf32>
    %20 = arith.cmpf ogt, %17, %19 : vector<32x256xf32>
    %21 = vector.broadcast %18 : f32 to vector<32x256xf32>
    %22 = arith.mulf %21, %17 : vector<32x256xf32>
    %23 = arith.select %20, %17, %22 : vector<32x256xi1>, vector<32x256xf32>
    %24 = arith.truncf %23 : vector<32x256xf32> to vector<32x256xbf16>
    %c0_13 = arith.constant 0 : index
    %c0_14 = arith.constant 0 : index
    %25 = vector.load %arg7[%c0_13, %c0_14] : memref<256x128xbf16, #tpu.memory_space<vmem>>, vector<256x128xbf16>
    %cst_15 = arith.constant dense<0.000000e+00> : vector<32x128xf32>
    %26 = tpu.matmul %24, %25, %cst_15 {dimension_numbers = #tpu.dot_dimension_numbers<[1], [0], [0], [1], [0, 0, 1, 1], [], []>} : vector<32x256xbf16>, vector<256x128xbf16>, vector<32x128xf32> -> vector<32x128xf32>
    %c0_16 = arith.constant 0 : index
    %c0_17 = arith.constant 0 : index
    %27 = vector.load %arg8[%c0_16, %c0_17] : memref<1x128xf32, #tpu.memory_space<vmem>>, vector<1x128xf32>
    %28 = vector.broadcast %27 : vector<1x128xf32> to vector<32x128xf32>
    %29 = arith.addf %26, %28 : vector<32x128xf32>
    %c2 = arith.constant 2 : index
    %30 = memref.load %arg1[%c2] : memref<3xf32, #tpu.memory_space<smem>>
    %cst_18 = arith.constant 0.000000e+00 : f32
    %31 = vector.broadcast %cst_18 : f32 to vector<32x128xf32>
    %32 = arith.cmpf ogt, %29, %31 : vector<32x128xf32>
    %33 = vector.broadcast %30 : f32 to vector<32x128xf32>
    %34 = arith.mulf %33, %29 : vector<32x128xf32>
    %35 = arith.select %32, %29, %34 : vector<32x128xi1>, vector<32x128xf32>
    %36 = arith.truncf %35 : vector<32x128xf32> to vector<32x128xbf16>
    %c0_19 = arith.constant 0 : index
    %c0_20 = arith.constant 0 : index
    %37 = vector.load %arg9[%c0_19, %c0_20] : memref<128x128xbf16, #tpu.memory_space<vmem>>, vector<128x128xbf16>
    %cst_21 = arith.constant dense<0.000000e+00> : vector<32x128xf32>
    %38 = tpu.matmul %36, %37, %cst_21 {dimension_numbers = #tpu.dot_dimension_numbers<[1], [0], [0], [1], [0, 0, 1, 1], [], []>} : vector<32x128xbf16>, vector<128x128xbf16>, vector<32x128xf32> -> vector<32x128xf32>
    %c0_22 = arith.constant 0 : index
    %c0_23 = arith.constant 0 : index
    %39 = vector.load %arg10[%c0_22, %c0_23] : memref<1x128xf32, #tpu.memory_space<vmem>>, vector<1x128xf32>
    %40 = vector.broadcast %39 : vector<1x128xf32> to vector<32x128xf32>
    %41 = arith.addf %38, %40 : vector<32x128xf32>
    %c0_24 = arith.constant 0 : index
    %c0_25 = arith.constant 0 : index
    %42 = vector.load %arg11[%c0_24, %c0_25] : memref<32x128xf32, #tpu.memory_space<vmem>>, vector<32x128xf32>
    tpu.vector_store %arg11[%c0_24, %c0_25], %41 {strides = array<i32>} : memref<32x128xf32, #tpu.memory_space<vmem>>, vector<32x128xf32>,
    return
  }
  func.func @transform_0(%arg0: i32) -> i32 {
    %c0_i32 = arith.constant 0 : i32
    %c0_i32_0 = arith.constant 0 : i32
    return %c0_i32 : i32
  }
  func.func @transform_1(%arg0: i32) -> (i32, i32) {
    %c0_i32 = arith.constant 0 : i32
    %c0_i32_0 = arith.constant 0 : i32
    return %arg0, %c0_i32 : i32, i32
  }
  func.func @transform_2(%arg0: i32) -> (i32, i32) {
    %c0_i32 = arith.constant 0 : i32
    %c0_i32_0 = arith.constant 0 : i32
    %c0_i32_1 = arith.constant 0 : i32
    return %c0_i32, %c0_i32_0 : i32, i32
  }
  func.func @transform_3(%arg0: i32) -> (i32, i32) {
    %c0_i32 = arith.constant 0 : i32
    %c0_i32_0 = arith.constant 0 : i32
    %c0_i32_1 = arith.constant 0 : i32
    return %c0_i32, %c0_i32_0 : i32, i32
  }
  func.func @transform_4(%arg0: i32) -> (i32, i32) {
    %c0_i32 = arith.constant 0 : i32
    %c0_i32_0 = arith.constant 0 : i32
    %c0_i32_1 = arith.constant 0 : i32
    return %c0_i32, %c0_i32_0 : i32, i32
  }
  func.func @transform_5(%arg0: i32) -> (i32, i32) {
    %c0_i32 = arith.constant 0 : i32
    %c0_i32_0 = arith.constant 0 : i32
    %c0_i32_1 = arith.constant 0 : i32
    return %c0_i32, %c0_i32_0 : i32, i32
  }
  func.func @transform_6(%arg0: i32) -> (i32, i32) {
    %c0_i32 = arith.constant 0 : i32
    %c0_i32_0 = arith.constant 0 : i32
    %c0_i32_1 = arith.constant 0 : i32
    return %c0_i32, %c0_i32_0 : i32, i32
  }
  func.func @transform_7(%arg0: i32) -> (i32, i32) {
    %c0_i32 = arith.constant 0 : i32
    %c0_i32_0 = arith.constant 0 : i32
    %c0_i32_1 = arith.constant 0 : i32
    return %c0_i32, %c0_i32_0 : i32, i32
  }
  func.func @transform_8(%arg0: i32) -> (i32, i32) {
    %c0_i32 = arith.constant 0 : i32
    %c0_i32_0 = arith.constant 0 : i32
    %c0_i32_1 = arith.constant 0 : i32
    return %c0_i32, %c0_i32_0 : i32, i32
  }
  func.func @transform_9(%arg0: i32) -> (i32, i32) {
    %c0_i32 = arith.constant 0 : i32
    %c0_i32_0 = arith.constant 0 : i32
    %c0_i32_1 = arith.constant 0 : i32
    return %c0_i32, %c0_i32_0 : i32, i32
  }
  func.func @transform_10(%arg0: i32) -> (i32, i32) {
    %c0_i32 = arith.constant 0 : i32
    %c0_i32_0 = arith.constant 0 : i32
    return %arg0, %c0_i32 : i32, i32
  }
}

</mosaic_0001>

<bundles_post_ra>
// kernel: tpu_custom_call.1
= control target key start
LH: loop header
LB: loop body
LE: loop exit
PB: predicated region body
PF: predicated region fallthrough
CT: control target
= control target key end

     0   :  { %s3214_s0 = inlined_call_operand.hbm [shape: f32[3], index: 0, kind: input, shape index: {}]   ;;  %s3215_s1 = inlined_call_operand.hbm [shape: bf16[64,128], index: 1, kind: input, shape index: {}]   ;;  %s3216_s2 = inlined_call_operand.hbm [shape: bf16[128,512], index: 2, kind: input, shape index: {}]   ;;  %s3217_s3 = inlined_call_operand.hbm [shape: f32[1,512], index: 3, kind: input, shape index: {}]   ;;  %s3218_s4 = inlined_call_operand.hbm [shape: bf16[512,256], index: 4, kind: input, shape index: {}]   ;;  %s3219_s5 = inlined_call_operand.vmem [shape: f32[1,256], index: 5, kind: input, shape index: {}]   ;;  %s3220_s6 = inlined_call_operand.hbm [shape: bf16[256,128], index: 6, kind: input, shape index: {}]   ;;  %s3221_s7 = inlined_call_operand.vmem [shape: f32[1,128], index: 7, kind: input, shape index: {}]   ;;  %s3222_s8 = inlined_call_operand.hbm [shape: bf16[128,128], index: 8, kind: input, shape index: {}]   ;;  %s3223_s9 = inlined_call_operand.vmem [shape: f32[1,128], index: 9, kind: input, shape index: {}]   ;;  %s3224_s10 = inlined_call_operand.hbm [shape: f32[64,128], index: 10, kind: output, shape index: {}]  }
   0x1   :  { %3227 = sst [smem:[#allocation22_spill]] %s3214_s0 }
   0x2   :  { %3228 = sst [smem:[#allocation23_spill]] %s3216_s2 }
   0x3   :  { %3229 = sst [smem:[#allocation24_spill]] %s3217_s3 }
   0x4   :  { %3230 = sst [smem:[#allocation25_spill]] %s3218_s4 }
   0x5   :  { %3231 = sst [smem:[#allocation26_spill]] %s3220_s6 }
   0x6   :  { %15 = vsyncpa [#allocation5], 0 }
   0x7   :  { %16 = vsyncpa [#allocation3], 0 }
   0x8   :  { %18 = vsyncpa [#allocation3 + $0x1], 0 }
   0x9   :  { %19 = vsyncpa [#allocation8], 0 }
   0xa   :  { %20 = vsyncpa [#allocation11], 0 }
   0xb   :  { %21 = vsyncpa [#allocation14], 0 }
   0xc   :  { %22 = vsyncpa [#allocation4], 0 }
   0xd   :  { %24 = vsyncpa [#allocation4 + $0x1], 0  ;;  %s2940_s13 = smov 0   ;;  %s2942_s14 = smov 0  }
   0xe   :  { %s2944_s15 = smov 0   ;;  %s2946_s16 = smov 0  }
   0xf LB: > { %s3232_s2 = sld [smem:[#allocation23_spill]]  ;;  %s2964_s20 = sadd.s32 4294967295, %s2869_s16   ;;  %s2869_s16 = sphi %s2946_s16, %s3250_s16   ;;  %s2865_s15 = sphi %s2944_s15, %s3249_s15   ;;  %s2861_s14 = sphi %s2942_s14, %s3248_s14   ;;  %s2857_s13 = sphi %s2940_s13, %s3247_s13  }
  0x10   : > { %p1828_p0 = scmp.ge.s32.totalorder %s2869_s16, 1  ;;  %p72_p1 = scmp.eq.s32.totalorder %s2964_s20, 0 }
  0x11   : > { %p276_p2 = scmp.lt.s32.totalorder %s2869_s16, 3  ;;  %s2871_s22 = smov [#allocation7]  }
  0x12   : > { %s299_s23 = sshll.u32 %s2871_s22, 4  ;;  %s3234_s4 = sld [smem:[#allocation25_spill]]  ;;  %s300_s23 = int_to_ptr.vmem [resolvable:$true] %s299_s23 }
  0x13   : > { %p2969_p3 = pnand %p1828_p0, %p276_p2  ;;  %s2872_s28 = smov [#allocation10]  }
  0x14   : > { %s325_s29 = sshll.u32 %s2872_s28, 4  ;;  %s2873_s30 = smov 256   ;;  %s326_s29 = int_to_ptr.vmem [resolvable:$true] %s325_s29 }
  0x15   : > { %s297_s19 = sshll.u32 %s3232_s2, 4  ;;  %p2503_p4 = pneg %p2969_p3  ;;  %s298_s19 = int_to_ptr.hbm [resolvable:$true] %s297_s19 }
  0x16   : > { %s2874_s11 = smov 16   ;;  %s2875_s12 = smov 128  }
  0x17   : > { %p2981_p6 = pnand %p2503_p4, %p72_p1  ;;  %s2876_s17 = smov 8  }
  0x18   : > { %s323_s26 = sshll.u32 %s3234_s4, 4  ;;  %s3236_s0 = sld [smem:[#allocation22_spill]]  ;;  %s324_s26 = int_to_ptr.hbm [resolvable:$true] %s323_s26 }
  0x19   : > { %2509 = dma.hbm_to_vmem [thread:$0]  (!%p2981_p6), %s298_s19, 4096, %s300_s23, [#allocation8], %s2873_s30, %s2873_s30, %s2874_s11  }
  0x1a   : > { %2515 = dma.hbm_to_vmem [thread:$0]  (!%p2981_p6), %s324_s26, 8192, %s326_s29, [#allocation11], %s2875_s12, %s2875_s12, %s2876_s17  }
  0x1b   : > { %s3237_s3 = sld [smem:[#allocation24_spill]]  ;;  %s2877_s28 = smov [#allocation2]  }
  0x1c   : > { %s2878_s19 = smov [#allocation9]   ;;  %s3238_s6 = sld [smem:[#allocation26_spill]] }
  0x1d   : > { %s314_s23 = sshll.u32 %s2878_s19, 4  ;;  %s2879_s2 = smov [#allocation12]   ;;  %s315_s23 = int_to_ptr.vmem [resolvable:$true] %s314_s23 }
  0x1e   : > { %s288_s24 = sshll.u32 %s3236_s0, 4  ;;  %s342_s29 = sshll.u32 %s2879_s2, 4  ;;  %s289_s24 = int_to_ptr.hbm [resolvable:$true] %s288_s24  ;;  %s343_s29 = int_to_ptr.vmem [resolvable:$true] %s342_s29 }
  0x1f   : > { %2506 = dma.hbm_to_smem (!%p2981_p6), %s289_s24, 16, %s2877_s28, [#allocation5]  }
  0x20   : > { %s357_s18 = sshll.u32 %s3222_s8, 4  ;;  %s3225_s22 = smov 64   ;;  %s358_s18 = int_to_ptr.hbm [resolvable:$true] %s357_s18 }
  0x21   : > { %s312_s4 = sshll.u32 %s3237_s3, 4  ;;  %s3226_s24 = smov 4   ;;  %s313_s4 = int_to_ptr.hbm [resolvable:$true] %s312_s4 }
  0x22   : > { %s340_s26 = sshll.u32 %s3238_s6, 4  ;;  %s1827_s28 = sadd.s32 4294967294, %s2869_s16   ;;  %s341_s26 = int_to_ptr.hbm [resolvable:$true] %s340_s26 }
  0x23   : > { %2512 = dma.hbm_to_vmem [thread:$0]  (!%p2981_p6), %s313_s4, 64, %s315_s23, [#allocation8]  }
  0x24   : > { %2518 = dma.hbm_to_vmem [thread:$0]  (!%p2981_p6), %s341_s26, 2048, %s343_s29, [#allocation11], %s3225_s22, %s3225_s22, %s3226_s24  }
  0x25   : > { %s2882_s4 = smov [#allocation13]   ;;  %s3017_s19 = sadd.s32 1, %s2869_s16  }
  0x26   : > { %s359_s25 = sshll.u32 %s2882_s4, 4  ;;  %s55_s23 = ssub.s32 %s2869_s16, %s3017_s19  ;;  %s360_s25 = int_to_ptr.vmem [resolvable:$true] %s359_s25 }
  0x27   : > { %2521 = dma.hbm_to_vmem [thread:$0]  (!%p2981_p6), %s358_s18, 1024, %s360_s25, [#allocation14], %s3225_s22, %s3225_s22, %s3226_s24  }
  0x28   : > { %s58_s30 = sadd.s32 1, %s2865_s15  ;;  %p56_p7 = scmp.eq.s32.totalorder %s55_s23, 0 }
  0x29   : > { %p65_p8 = scmp.ne.s32.totalorder %s2865_s15, %s2861_s14  ;;  %p66_p9 = scmp.eq.s32.totalorder %s2869_s16, 0 }
  0x2a   : > { %p71_p10 = scmp.ne.s32.totalorder %s2861_s14, %s2857_s13  ;;  %p263_p13 = scmp.eq.s32.totalorder %s2964_s20, 1 }
  0x2b   : > { %s3028_s11 = scalar_select %p56_p7, %s2865_s15, %s58_s30  }
  0x2c   : > { %p3030_p11 = por %p66_p9, %p65_p8  ;;  %p3036_p12 = por %p72_p1, %p71_p10 }
  0x2d   : > { %p269_p0 = scmp.eq.s32.totalorder %s1827_s28, 1  ;;  %p2536_p2 = scmp.lt.s32.totalorder %s2869_s16, 2 }
  0x2e   : > { %s376_s2 = sand.u32 1, %s2865_s15   ;;  %p3043_p4 = por %p263_p13, %p65_p8 }
  0x2f   : > { %p3047_p6 = por %p269_p0, %p71_p10  ;;  %s1836_s17 = sshll.u32 %s376_s2, 4 }
  0x30   : > { %s2343_s18 = sshll.u32 %s2869_s16, 4  ;;  %s380_s30 = scalar_lea.vmem [#allocation6], %s1836_s17 }
  0x31   : > { %s385_s23 = scalar_lea.hbm %s3215_s1, %s2343_s18  ;;  %s388_s22 = sshll.u32 %s380_s30, 4  ;;  %s389_s22 = int_to_ptr.vmem [resolvable:$true] %s388_s22 }
  0x32   : > { %s386_s24 = sshll.u32 %s385_s23, 4  ;;  %p3057_p7 = pnand %p2536_p2, %p3030_p11  ;;  %s387_s24 = int_to_ptr.hbm [resolvable:$true] %s386_s24 }
  0x33   : > { %s377_s0 = scalar_lea.sflag [#allocation3], %s376_s2  ;;  %s2757_s3 = sshra.s32 %s387_s24, 4  ;;  %s2758_s3 = int_to_ptr.hbm [resolvable:$true] %s2757_s3 }
  0x34   : > { %s2759_s6 = scalar_lea.hbm %s2758_s3, 16  ;;  %p2761_p9 = pneg %p3057_p7 }
  0x35   : > { %p2760_p8 = scmp.ne.s32.totalorder %s2758_s3, %s2759_s6  ;;  %s2764_s4 = scalar_lea.hbm %s3215_s1, 32 }
  0x36   : > { %p2765_p11 = scmp.lt.s32.totalorder %s2758_s3, %s3215_s1  ;;  %p2766_p0 = scmp.lt.s32.totalorder %s2764_s4, %s2759_s6 }
  0x37   : > { %p2762_p10 = pnand %p2761_p9, %p2760_p8 }
  0x38   : > { %p2767_p2 = por %p2766_p0, %p2765_p11 }
  0x39   : > { %p2763_p13 = pneg %p2762_p10 }
  0x3b   : > { %p2768_p5 = pnand %p2767_p2, %p2763_p13 }
  0x3d   : > { %2771 = shalt.err (!%p2768_p5)
}
  0x3e   : > { %s3244_s2 = smov 4   ;;  %s3245_s23 = smov 64  }
  0x3f   : > { %2525 = dma.hbm_to_vmem [thread:$0]  (!%p3057_p7), %s387_s24, 256, %s389_s22, %s377_s0, %s3245_s23, %s3245_s23, %s3244_s2  }
  0x40   : > { %400 = sbr.rel (%p2969_p3) target bundleno = 749 (0x2ed), region = 60 }
  0x45   : > { %2832 = dma.done.wait (%p72_p1), [#allocation5], 16  }
  0x46   : > { %2834 = vsyncadd (%p72_p1), [#allocation5], 4294967280  ;;  %s3081_s3 = sand.u32 1, %s2861_s14  }
  0x47   : > { %s1841_s6 = sshll.u32 %s3081_s3, 4  ;;  %s408_s30 = scalar_lea.sflag [#allocation3], %s3081_s3 }
  0x48   : > { %s3085_s28 = scalar_lea.vmem [#allocation6], %s1841_s6 }
  0x49   : > { %2836 = dma.done.wait (%p3036_p12), %s408_s30, 256  }
  0x4a   : > { %2838 = vsyncadd (%p3036_p12), %s408_s30, 4294967040 }
  0x4b   : > { %2840 = dma.done.wait (%p72_p1), [#allocation8], 4160  }
  0x4c   : > { %2842 = vsyncadd (%p72_p1), [#allocation8], 4294963136 }
  0x4d   : > { %2844 = dma.done.wait (%p72_p1), [#allocation11], 10240  }
  0x4e   : > { %2846 = vsyncadd (%p72_p1), [#allocation11], 4294957056 }
  0x4f   : > { %2848 = dma.done.wait (%p72_p1), [#allocation14], 1024  }
  0x50   : > { %2850 = vsyncadd (%p72_p1), [#allocation14], 4294966272 }
  0x51   : > { %442 = sfence }
  0x52   : > { %v1970_v0 = vld [vmem:[#allocation7 + $0xe0] sm:$0xf]  ;;  %v2376_v1 = vld [vmem:[#allocation7 + $0xec] sm:$0xf0]  ;;  %v2374_v2 = vld [vmem:[#allocation7 + $0xe4] sm:$0xf] }
  0x53   : > { %v1971_v3 = vor.u32 %v2376_v1, %v1970_v0  ;;  %v1972_v4 = vld [vmem:[#allocation7 + $0xf0] sm:$0xf0]  ;;  %v1978_v5 = vld [vmem:[#allocation7 + $0xe8] sm:$0xf]  ;;  %v2377_v6 = vld [vmem:[#allocation7 + $0xf4] sm:$0xf0] }
  0x54   : > { %v1975_v7 = vor.u32 %v2374_v2, %v1972_v4  ;;  %v1979_v8 = vor.u32 %v2377_v6, %v1978_v5  ;;  %v2375_v9 = vld [vmem:[#allocation7 + $0xec] sm:$0xf]  ;;  %v1980_v10 = vld [vmem:[#allocation7 + $0xf8] sm:$0xf0]  ;;  %v1954_v11 = vld [vmem:[#allocation7 + $0xc0] sm:$0xf] }
  0x55   : > { %695 = vmatpush.bf16.msra.mxu0 %v1971_v3  ;;  %v1983_v12 = vor.u32 %v2375_v9, %v1980_v10  ;;  %v2372_v13 = vld [vmem:[#allocation7 + $0xcc] sm:$0xf0]  ;;  %v2370_v14 = vld [vmem:[#allocation7 + $0xc4] sm:$0xf]  ;;  %v1956_v15 = vld [vmem:[#allocation7 + $0xd0] sm:$0xf0] }
  0x56   : > { %714 = vmatpush.bf16.msra.mxu1 %v1975_v7  ;;  %733 = vmatpush.bf16.msra.mxu2 %v1979_v8  ;;  %v1955_v16 = vor.u32 %v2372_v13, %v1954_v11  ;;  %v1959_v17 = vor.u32 %v2370_v14, %v1956_v15  ;;  %v1962_v18 = vld [vmem:[#allocation7 + $0xc8] sm:$0xf]  ;;  %v2373_v19 = vld [vmem:[#allocation7 + $0xd4] sm:$0xf0]  ;;  %v2371_v20 = vld [vmem:[#allocation7 + $0xcc] sm:$0xf] }
  0x57   : > { %752 = vmatpush.bf16.msra.mxu3 %v1983_v12  ;;  %v1963_v21 = vor.u32 %v2373_v19, %v1962_v18  ;;  %v1964_v22 = vld [vmem:[#allocation7 + $0xd8] sm:$0xf0]  ;;  %v1938_v23 = vld [vmem:[#allocation7 + $0xa0] sm:$0xf]  ;;  %v2368_v24 = vld [vmem:[#allocation7 + $0xac] sm:$0xf0] }
  0x58   : > { %v1967_v25 = vor.u32 %v2371_v20, %v1964_v22  ;;  %v2366_v26 = vld [vmem:[#allocation7 + $0xa4] sm:$0xf]  ;;  %v1940_v27 = vld [vmem:[#allocation7 + $0xb0] sm:$0xf0]  ;;  %v1946_v28 = vld [vmem:[#allocation7 + $0xa8] sm:$0xf]  ;;  %v1939_v29 = vor.u32 %v2368_v24, %v1938_v23 }
  0x59   : > { %696 = vmatpush.bf16.msra.mxu0 %v1955_v16  ;;  %v2369_v30 = vld [vmem:[#allocation7 + $0xb4] sm:$0xf0]  ;;  %v2367_v31 = vld [vmem:[#allocation7 + $0xac] sm:$0xf]  ;;  %v1948_v32 = vld [vmem:[#allocation7 + $0xb8] sm:$0xf0]  ;;  %v1943_v33 = vor.u32 %v2366_v26, %v1940_v27 }
  0x5a   : > { %715 = vmatpush.bf16.msra.mxu1 %v1959_v17  ;;  %734 = vmatpush.bf16.msra.mxu2 %v1963_v21  ;;  %v1947_v34 = vor.u32 %v2369_v30, %v1946_v28  ;;  %v1922_v35 = vld [vmem:[#allocation7 + $0x80] sm:$0xf]  ;;  %v2364_v36 = vld [vmem:[#allocation7 + $0x8c] sm:$0xf0]  ;;  %v2362_v37 = vld [vmem:[#allocation7 + $0x84] sm:$0xf]  ;;  %v1951_v38 = vor.u32 %v2367_v31, %v1948_v32 }
  0x5b   : > { %753 = vmatpush.bf16.msra.mxu3 %v1967_v25  ;;  %v1924_v39 = vld [vmem:[#allocation7 + $0x90] sm:$0xf0]  ;;  %v1930_v40 = vld [vmem:[#allocation7 + $0x88] sm:$0xf]  ;;  %v2365_v41 = vld [vmem:[#allocation7 + $0x94] sm:$0xf0]  ;;  %v1923_v44 = vor.u32 %v2364_v36, %v1922_v35 }
  0x5c   : > { %v2363_v42 = vld [vmem:[#allocation7 + $0x8c] sm:$0xf]  ;;  %v1932_v43 = vld [vmem:[#allocation7 + $0x98] sm:$0xf0]  ;;  %v1927_v45 = vor.u32 %v2362_v37, %v1924_v39  ;;  %v1931_v46 = vor.u32 %v2365_v41, %v1930_v40  ;;  %v1906_v47 = vld [vmem:[#allocation7 + $0x60] sm:$0xf] }
  0x5d   : > { %697 = vmatpush.bf16.msra.mxu0 %v1939_v29  ;;  %v2360_v48 = vld [vmem:[#allocation7 + $0x6c] sm:$0xf0]  ;;  %v2358_v49 = vld [vmem:[#allocation7 + $0x64] sm:$0xf]  ;;  %v1935_v50 = vor.u32 %v2363_v42, %v1932_v43  ;;  %v1908_v51 = vld [vmem:[#allocation7 + $0x70] sm:$0xf0] }
  0x5e   : > { %716 = vmatpush.bf16.msra.mxu1 %v1943_v33  ;;  %735 = vmatpush.bf16.msra.mxu2 %v1947_v34  ;;  %v1914_v52 = vld [vmem:[#allocation7 + $0x68] sm:$0xf]  ;;  %v2361_v53 = vld [vmem:[#allocation7 + $0x74] sm:$0xf0]  ;;  %v2359_v54 = vld [vmem:[#allocation7 + $0x6c] sm:$0xf]  ;;  %v1907_v56 = vor.u32 %v2360_v48, %v1906_v47  ;;  %v1911_v57 = vor.u32 %v2358_v49, %v1908_v51 }
  0x5f   : > { %754 = vmatpush.bf16.msra.mxu3 %v1951_v38  ;;  %v1916_v55 = vld [vmem:[#allocation7 + $0x78] sm:$0xf0]  ;;  %v1915_v58 = vor.u32 %v2361_v53, %v1914_v52  ;;  %v1890_v59 = vld [vmem:[#allocation7 + $0x40] sm:$0xf]  ;;  %v2356_v60 = vld [vmem:[#allocation7 + $0x4c] sm:$0xf0] }
  0x60   : > { %v2354_v61 = vld [vmem:[#allocation7 + $0x44] sm:$0xf]  ;;  %v1919_v62 = vor.u32 %v2359_v54, %v1916_v55  ;;  %v1892_v63 = vld [vmem:[#allocation7 + $0x50] sm:$0xf0]  ;;  %v1898_v0 = vld [vmem:[#allocation7 + $0x48] sm:$0xf]  ;;  %v1891_v4 = vor.u32 %v2356_v60, %v1890_v59 }
  0x61   : > { %698 = vmatpush.bf16.msra.mxu0 %v1923_v44  ;;  %v2357_v1 = vld [vmem:[#allocation7 + $0x54] sm:$0xf0]  ;;  %v2355_v2 = vld [vmem:[#allocation7 + $0x4c] sm:$0xf]  ;;  %v1900_v3 = vld [vmem:[#allocation7 + $0x58] sm:$0xf0]  ;;  %v1895_v5 = vor.u32 %v2354_v61, %v1892_v63 }
  0x62   : > { %717 = vmatpush.bf16.msra.mxu1 %v1927_v45  ;;  %736 = vmatpush.bf16.msra.mxu2 %v1931_v46  ;;  %v1899_v6 = vor.u32 %v2357_v1, %v1898_v0  ;;  %v1874_v7 = vld [vmem:[#allocation7 + $0x20] sm:$0xf]  ;;  %v2352_v8 = vld [vmem:[#allocation7 + $0x2c] sm:$0xf0]  ;;  %v2350_v9 = vld [vmem:[#allocation7 + $0x24] sm:$0xf]  ;;  %v1903_v10 = vor.u32 %v2355_v2, %v1900_v3 }
  0x63   : > { %755 = vmatpush.bf16.msra.mxu3 %v1935_v50  ;;  %v1876_v11 = vld [vmem:[#allocation7 + $0x30] sm:$0xf0]  ;;  %v1882_v12 = vld [vmem:[#allocation7 + $0x28] sm:$0xf]  ;;  %v2353_v13 = vld [vmem:[#allocation7 + $0x34] sm:$0xf0]  ;;  %v1875_v16 = vor.u32 %v2352_v8, %v1874_v7 }
  0x64   : > { %v2351_v14 = vld [vmem:[#allocation7 + $0x2c] sm:$0xf]  ;;  %v1884_v15 = vld [vmem:[#allocation7 + $0x38] sm:$0xf0]  ;;  %v1858_v17 = vld [vmem:[#allocation7] sm:$0xf]  ;;  %v1879_v18 = vor.u32 %v2350_v9, %v1876_v11  ;;  %v1883_v19 = vor.u32 %v2353_v13, %v1882_v12 }
  0x65   : > { %699 = vmatpush.bf16.msra.mxu0 %v1907_v56  ;;  %v2348_v20 = vld [vmem:[#allocation7 + $0xc] sm:$0xf0]  ;;  %v2346_v21 = vld [vmem:[#allocation7 + $0x4] sm:$0xf]  ;;  %v1860_v22 = vld [vmem:[#allocation7 + $0x10] sm:$0xf0]  ;;  %v1887_v23 = vor.u32 %v2351_v14, %v1884_v15 }
  0x66   : > { %718 = vmatpush.bf16.msra.mxu1 %v1911_v57  ;;  %737 = vmatpush.bf16.msra.mxu2 %v1915_v58  ;;  %v1866_v24 = vld [vmem:[#allocation7 + $0x8] sm:$0xf]  ;;  %v2349_v25 = vld [vmem:[#allocation7 + $0x14] sm:$0xf0]  ;;  %v2347_v26 = vld [vmem:[#allocation7 + $0xc] sm:$0xf]  ;;  %v1859_v30 = vor.u32 %v2348_v20, %v1858_v17  ;;  %v1863_v33 = vor.u32 %v2346_v21, %v1860_v22 }
  0x67   : > { %756 = vmatpush.bf16.msra.mxu3 %v1919_v62  ;;  %v1868_v27 = vld [vmem:[#allocation7 + $0x18] sm:$0xf0]  ;;  %v2042_v28 = vld [vmem:[#allocation10 + $0x70] sm:$0xf]  ;;  %v1867_v34 = vor.u32 %v2349_v25, %v1866_v24  ;;  %v2034_v38 = vld [vmem:[#allocation10 + $0x60] sm:$0xf] }
  0x68   : > { %v2393_v29 = vld [vmem:[#allocation10 + $0x74] sm:$0xf0]  ;;  %v2106_v31 = vld [vmem:[#allocation10 + $0xf0] sm:$0xf]  ;;  %v1871_v36 = vor.u32 %v2347_v26, %v1868_v27  ;;  %v2391_v42 = vld [vmem:[#allocation10 + $0x64] sm:$0xf0] }
  0x69   : > { %700 = vmatpush.bf16.msra.mxu0 %v1891_v4  ;;  %v2409_v32 = vld [vmem:[#allocation10 + $0xf4] sm:$0xf0]  ;;  %v2344_v35 = vld [vmem:[%s3085_s28] sm:$0xff]  ;;  %v2043_v37 = vor.u32 %v2393_v29, %v2042_v28  ;;  %v2407_v46 = vld [vmem:[#allocation10 + $0xe4] sm:$0xf0]  ;;  %v2035_v48 = vor.u32 %v2391_v42, %v2034_v38  ;;  %s3105_s0 = sld [smem:[#allocation2]] }
  0x6a   : > { %719 = vmatpush.bf16.msra.mxu1 %v1895_v5  ;;  %738 = vmatpush.bf16.msra.mxu2 %v1899_v6  ;;  %v2170_v39 = vld [vmem:[#allocation10 + $0x170] sm:$0xf]  ;;  %v2425_v40 = vld [vmem:[#allocation10 + $0x174] sm:$0xf0]  ;;  %v2107_v41 = vor.u32 %v2409_v32, %v2106_v31  ;;  %v2098_v45 = vld [vmem:[#allocation10 + $0xe0] sm:$0xf] }
  0x6b   : > { %757 = vmatpush.bf16.msra.mxu3 %v1903_v10  ;;  %v2234_v43 = vld [vmem:[#allocation10 + $0x1f0] sm:$0xf]  ;;  %v2441_v44 = vld [vmem:[#allocation10 + $0x1f4] sm:$0xf0]  ;;  %v2171_v47 = vor.u32 %v2425_v40, %v2170_v39  ;;  %v2162_v51 = vld [vmem:[#allocation10 + $0x160] sm:$0xf]  ;;  %v2099_v53 = vor.u32 %v2407_v46, %v2098_v45 }
  0x6c   : > { %v2235_v49 = vor.u32 %v2441_v44, %v2234_v43  ;;  %v2026_v50 = vld [vmem:[#allocation10 + $0x50] sm:$0xf]  ;;  %v2423_v52 = vld [vmem:[#allocation10 + $0x164] sm:$0xf0]  ;;  %v2389_v54 = vld [vmem:[#allocation10 + $0x54] sm:$0xf0] }
  0x6d   : > { %701 = vmatpush.bf16.msra.mxu0 %v1875_v16  ;;  %v2226_v55 = vld [vmem:[#allocation10 + $0x1e0] sm:$0xf]  ;;  %v2439_v56 = vld [vmem:[#allocation10 + $0x1e4] sm:$0xf0]  ;;  %v2090_v57 = vld [vmem:[#allocation10 + $0xd0] sm:$0xf]  ;;  %v2163_v59 = vor.u32 %v2423_v52, %v2162_v51  ;;  %v2027_v60 = vor.u32 %v2389_v54, %v2026_v50 }
  0x6e   : > { %720 = vmatpush.bf16.msra.mxu1 %v1879_v18  ;;  %739 = vmatpush.bf16.msra.mxu2 %v1883_v19  ;;  %v2405_v58 = vld [vmem:[#allocation10 + $0xd4] sm:$0xf0]  ;;  %v2227_v61 = vor.u32 %v2439_v56, %v2226_v55  ;;  %v2018_v62 = vld [vmem:[#allocation10 + $0x40] sm:$0xf]  ;;  %v2154_v63 = vld [vmem:[#allocation10 + $0x150] sm:$0xf] }
  0x6f   : > { %758 = vmatpush.bf16.msra.mxu3 %v1887_v23  ;;  %v2421_v0 = vld [vmem:[#allocation10 + $0x154] sm:$0xf0]  ;;  %v2091_v1 = vor.u32 %v2405_v58, %v2090_v57  ;;  %v2387_v2 = vld [vmem:[#allocation10 + $0x44] sm:$0xf0]  ;;  %v2218_v3 = vld [vmem:[#allocation10 + $0x1d0] sm:$0xf] }
  0x70   : > { %v2437_v4 = vld [vmem:[#allocation10 + $0x1d4] sm:$0xf0]  ;;  %v2082_v5 = vld [vmem:[#allocation10 + $0xc0] sm:$0xf]  ;;  %v2403_v6 = vld [vmem:[#allocation10 + $0xc4] sm:$0xf0]  ;;  %v2155_v7 = vor.u32 %v2421_v0, %v2154_v63  ;;  %v2019_v8 = vor.u32 %v2387_v2, %v2018_v62 }
  0x71   : > { %702 = vmatpush.bf16.msra.mxu0 %v1859_v30  ;;  %v2219_v9 = vor.u32 %v2437_v4, %v2218_v3  ;;  %v2083_v10 = vor.u32 %v2403_v6, %v2082_v5  ;;  %v2345_v11 = vld [vmem:[%s3085_s28 + $0x8] sm:$0xff]  ;;  %v2010_v12 = vld [vmem:[#allocation10 + $0x30] sm:$0xf]  ;;  %v2146_v18 = vld [vmem:[#allocation10 + $0x140] sm:$0xf]  ;;  %s2240_s24 = sld [smem:[#allocation2 + $0x1]] }
  0x72   : > { %721 = vmatpush.bf16.msra.mxu1 %v1863_v33  ;;  %740 = vmatpush.bf16.msra.mxu2 %v1867_v34  ;;  %v2385_v13 = vld [vmem:[#allocation10 + $0x34] sm:$0xf0]  ;;  %v2074_v14 = vld [vmem:[#allocation10 + $0xb0] sm:$0xf]  ;;  %v2419_v19 = vld [vmem:[#allocation10 + $0x144] sm:$0xf0] }
  0x73   : > { %759 = vmatpush.bf16.msra.mxu3 %v1871_v36  ;;  %v2011_v15 = vor.u32 %v2385_v13, %v2010_v12  ;;  %v2401_v16 = vld [vmem:[#allocation10 + $0xb4] sm:$0xf0]  ;;  %v2210_v20 = vld [vmem:[#allocation10 + $0x1c0] sm:$0xf]  ;;  %v2147_v21 = vor.u32 %v2419_v19, %v2146_v18  ;;  %v2435_v22 = vld [vmem:[#allocation10 + $0x1c4] sm:$0xf0] }
  0x74   : > { %703 = vmatmul.bf16.vlgmr.msra.gmra.mxu0 %v2344_v35  ;;  %v2075_v17 = vor.u32 %v2401_v16, %v2074_v14  ;;  %v2211_v23 = vor.u32 %v2435_v22, %v2210_v20  ;;  %v2002_v24 = vld [vmem:[#allocation10 + $0x20] sm:$0xf]  ;;  %v2383_v25 = vld [vmem:[#allocation10 + $0x24] sm:$0xf0]  ;;  %v2138_v30 = vld [vmem:[#allocation10 + $0x130] sm:$0xf] }
  0x75   : > { %1219 = vmatpush.bf16.msrb.mxu0 %v2043_v37  ;;  %722 = vmatmul.bf16.vlgmr.msra.gmra.mxu1 %v2344_v35  ;;  %v2066_v26 = vld [vmem:[#allocation10 + $0xa0] sm:$0xf]  ;;  %v2003_v27 = vor.u32 %v2383_v25, %v2002_v24  ;;  %v2399_v28 = vld [vmem:[#allocation10 + $0xa4] sm:$0xf0]  ;;  %v2417_v31 = vld [vmem:[#allocation10 + $0x134] sm:$0xf0] }
  0x76   : > { %1238 = vmatpush.bf16.msrb.mxu1 %v2107_v41  ;;  %741 = vmatmul.bf16.vlgmr.msra.gmra.mxu2 %v2344_v35  ;;  %v2067_v29 = vor.u32 %v2399_v28, %v2066_v26  ;;  %v2202_v32 = vld [vmem:[#allocation10 + $0x1b0] sm:$0xf]  ;;  %v2139_v33 = vor.u32 %v2417_v31, %v2138_v30  ;;  %v2433_v34 = vld [vmem:[#allocation10 + $0x1b4] sm:$0xf0]  ;;  %v2130_v42 = vld [vmem:[#allocation10 + $0x120] sm:$0xf] }
  0x77   : > { %760 = vmatmul.bf16.vlgmr.msra.gmra.mxu3 %v2344_v35  ;;  %1257 = vmatpush.bf16.msrb.mxu2 %v2171_v47  ;;  %v2203_v35 = vor.u32 %v2433_v34, %v2202_v32  ;;  %v1994_v36 = vld [vmem:[#allocation10 + $0x10] sm:$0xf]  ;;  %v2381_v37 = vld [vmem:[#allocation10 + $0x14] sm:$0xf0]  ;;  %v2415_v43 = vld [vmem:[#allocation10 + $0x124] sm:$0xf0] }
  0x78   : > { %1276 = vmatpush.bf16.msrb.mxu3 %v2235_v49  ;;  %v2058_v38 = vld [vmem:[#allocation10 + $0x90] sm:$0xf]  ;;  %v1995_v39 = vor.u32 %v2381_v37, %v1994_v36  ;;  %v2397_v40 = vld [vmem:[#allocation10 + $0x94] sm:$0xf0]  ;;  %v2194_v44 = vld [vmem:[#allocation10 + $0x1a0] sm:$0xf]  ;;  %v2131_v45 = vor.u32 %v2415_v43, %v2130_v42 }
  0x79   : > { %1220 = vmatpush.bf16.msrb.mxu0 %v2035_v48  ;;  %v2059_v41 = vor.u32 %v2397_v40, %v2058_v38  ;;  %v2431_v46 = vld [vmem:[#allocation10 + $0x1a4] sm:$0xf0]  ;;  %v1986_v48 = vld [vmem:[#allocation10] sm:$0xf]  ;;  %v2122_v54 = vld [vmem:[#allocation10 + $0x110] sm:$0xf] }
  0x7a   : > { %1239 = vmatpush.bf16.msrb.mxu1 %v2099_v53  ;;  %v2195_v47 = vor.u32 %v2431_v46, %v2194_v44  ;;  %v2379_v49 = vld [vmem:[#allocation10 + $0x4] sm:$0xf0]  ;;  %v2050_v50 = vld [vmem:[#allocation10 + $0x80] sm:$0xf]  ;;  %v2413_v55 = vld [vmem:[#allocation10 + $0x114] sm:$0xf0] }
  0x7b   : > { %1258 = vmatpush.bf16.msrb.mxu2 %v2163_v59  ;;  %v1987_v51 = vor.u32 %v2379_v49, %v1986_v48  ;;  %v2395_v52 = vld [vmem:[#allocation10 + $0x84] sm:$0xf0]  ;;  %v2186_v56 = vld [vmem:[#allocation10 + $0x190] sm:$0xf]  ;;  %v2123_v57 = vor.u32 %v2413_v55, %v2122_v54  ;;  %v2429_v58 = vld [vmem:[#allocation10 + $0x194] sm:$0xf0] }
  0x7c   : > { %1277 = vmatpush.bf16.msrb.mxu3 %v2227_v61  ;;  %v2051_v53 = vor.u32 %v2395_v52, %v2050_v50  ;;  %v2187_v59 = vor.u32 %v2429_v58, %v2186_v56  ;;  %v2044_v61 = vld [vmem:[#allocation10 + $0x78] sm:$0xf0]  ;;  %v2408_v62 = vld [vmem:[#allocation10 + $0xf4] sm:$0xf]  ;;  %v2114_v2 = vld [vmem:[#allocation10 + $0x100] sm:$0xf] }
  0x7d   : > { %1221 = vmatpush.bf16.msrb.mxu0 %v2027_v60  ;;  %v2392_v60 = vld [vmem:[#allocation10 + $0x74] sm:$0xf]  ;;  %v2108_v0 = vld [vmem:[#allocation10 + $0xf8] sm:$0xf0]  ;;  %v2411_v3 = vld [vmem:[#allocation10 + $0x104] sm:$0xf0] }
  0x7e   : > { %1240 = vmatpush.bf16.msrb.mxu1 %v2091_v1  ;;  %v2047_v63 = vor.u32 %v2392_v60, %v2044_v61  ;;  %v2111_v1 = vor.u32 %v2408_v62, %v2108_v0  ;;  %v2178_v4 = vld [vmem:[#allocation10 + $0x180] sm:$0xf]  ;;  %v2115_v5 = vor.u32 %v2411_v3, %v2114_v2  ;;  %v2427_v6 = vld [vmem:[#allocation10 + $0x184] sm:$0xf0]  ;;  %v2100_v12 = vld [vmem:[#allocation10 + $0xe8] sm:$0xf0] }
  0x7f   : > { %1259 = vmatpush.bf16.msrb.mxu2 %v2155_v7  ;;  %v2179_v7 = vor.u32 %v2427_v6, %v2178_v4  ;;  %v2424_v14 = vld [vmem:[#allocation10 + $0x174] sm:$0xf]  ;;  %v2236_v18 = vld [vmem:[#allocation10 + $0x1f8] sm:$0xf0]  ;;  %v2164_v28 = vld [vmem:[#allocation10 + $0x168] sm:$0xf0] }
  0x80   : > { %1278 = vmatpush.bf16.msrb.mxu3 %v2219_v9  ;;  %v2036_v9 = vld [vmem:[#allocation10 + $0x68] sm:$0xf0]  ;;  %v2440_v16 = vld [vmem:[#allocation10 + $0x1f4] sm:$0xf]  ;;  %v2092_v25 = vld [vmem:[#allocation10 + $0xd8] sm:$0xf0] }
  0x81   : > { %1222 = vmatpush.bf16.msrb.mxu0 %v2019_v8  ;;  %v2390_v8 = vld [vmem:[#allocation10 + $0x64] sm:$0xf]  ;;  %v2239_v19 = vor.u32 %v2440_v16, %v2236_v18  ;;  %v2388_v20 = vld [vmem:[#allocation10 + $0x54] sm:$0xf]  ;;  %v2228_v31 = vld [vmem:[#allocation10 + $0x1e8] sm:$0xf0] }
  0x82   : > { %1241 = vmatpush.bf16.msrb.mxu1 %v2083_v10  ;;  %v2406_v10 = vld [vmem:[#allocation10 + $0xe4] sm:$0xf]  ;;  %v2404_v22 = vld [vmem:[#allocation10 + $0xd4] sm:$0xf]  ;;  %v2020_v34 = vld [vmem:[#allocation10 + $0x48] sm:$0xf0] }
  0x83   : > { %1260 = vmatpush.bf16.msrb.mxu2 %v2147_v21  ;;  %v2103_v13 = vor.u32 %v2406_v10, %v2100_v12  ;;  %v2028_v21 = vld [vmem:[#allocation10 + $0x58] sm:$0xf0]  ;;  %v2095_v26 = vor.u32 %v2404_v22, %v2092_v25  ;;  %v2084_v38 = vld [vmem:[#allocation10 + $0xc8] sm:$0xf0]  ;;  %v2420_v40 = vld [vmem:[#allocation10 + $0x154] sm:$0xf] }
  0x84   : > { %708 = vmatmul.bf16.gmra.mxu0 %v2345_v11  ;;  %1279 = vmatpush.bf16.msrb.mxu3 %v2211_v23  ;;  %v513_v23 = vld [vmem:[#allocation9] sm:$0xf]  ;;  %v2031_v24 = vor.u32 %v2388_v20, %v2028_v21  ;;  %v2436_v42 = vld [vmem:[#allocation10 + $0x1d4] sm:$0xf]  ;;  %v2418_v56 = vld [vmem:[#allocation10 + $0x144] sm:$0xf] }
  0x85   : > { %727 = vmatmul.bf16.gmra.mxu1 %v2345_v11  ;;  %1223 = vmatpush.bf16.msrb.mxu0 %v2011_v15  ;;  %v2172_v15 = vld [vmem:[#allocation10 + $0x178] sm:$0xf0]  ;;  %v3107_v36 = vperm.slane %v513_v23, 0  ;;  %v3109_v43 = vperm.slane %v513_v23, 1  ;;  %v2384_v48 = vld [vmem:[#allocation10 + $0x34] sm:$0xf] }
  0x86   : > { %746 = vmatmul.bf16.gmra.mxu2 %v2345_v11  ;;  %1242 = vmatpush.bf16.msrb.mxu1 %v2075_v17  ;;  %v2175_v17 = vor.u32 %v2424_v14, %v2172_v15  ;;  %v2012_v49 = vld [vmem:[#allocation10 + $0x38] sm:$0xf0]  ;;  %v2400_v50 = vld [vmem:[#allocation10 + $0xb4] sm:$0xf]  ;;  %v2434_v58 = vld [vmem:[#allocation10 + $0x1c4] sm:$0xf] }
  0x87   : > { %765 = vmatmul.bf16.gmra.mxu3 %v2345_v11  ;;  %1261 = vmatpush.bf16.msrb.mxu2 %v2139_v33  ;;  %v2039_v11 = vor.u32 %v2390_v8, %v2036_v9  ;;  %v2386_v33 = vld [vmem:[#allocation10 + $0x44] sm:$0xf]  ;;  %v2076_v54 = vld [vmem:[#allocation10 + $0xb8] sm:$0xf0]  ;;  %v2212_v61 = vld [vmem:[#allocation10 + $0x1c8] sm:$0xf0] }
  0x88   : > { %1280 = vmatpush.bf16.msrb.mxu3 %v2203_v35  ;;  %v2402_v35 = vld [vmem:[#allocation10 + $0xc4] sm:$0xf]  ;;  %v2023_v37 = vor.u32 %v2386_v33, %v2020_v34  ;;  %v2079_v55 = vor.u32 %v2400_v50, %v2076_v54  ;;  %v2215_v0 = vor.u32 %v2434_v58, %v2212_v61  ;;  %v3116_v3 = vperm.slane %v513_v23, 2  ;;  %v2068_v6 = vld [vmem:[#allocation10 + $0xa8] sm:$0xf0]  ;;  %s2305_s26 = sld [smem:[#allocation2 + $0x2]] }
  0x89   : > { %1224 = vmatpush.bf16.msrb.mxu0 %v2003_v27  ;;  %v2422_v27 = vld [vmem:[#allocation10 + $0x164] sm:$0xf]  ;;  %v3118_v4 = vperm.slane %v513_v23, 3  ;;  %v2416_v8 = vld [vmem:[#allocation10 + $0x134] sm:$0xf]  ;;  %s1847_s4 = sshll.u32 %s3081_s3, 5 }
  0x8a   : > { %1243 = vmatpush.bf16.msrb.mxu1 %v2067_v29  ;;  %v2438_v29 = vld [vmem:[#allocation10 + $0x1e4] sm:$0xf]  ;;  %v2167_v30 = vor.u32 %v2422_v27, %v2164_v28  ;;  %v2140_v9 = vld [vmem:[#allocation10 + $0x138] sm:$0xf0]  ;;  %v2432_v10 = vld [vmem:[#allocation10 + $0x1b4] sm:$0xf] }
  0x8b   : > { %1262 = vmatpush.bf16.msrb.mxu2 %v2131_v45  ;;  %v2231_v32 = vor.u32 %v2438_v29, %v2228_v31  ;;  %v2220_v45 = vld [vmem:[#allocation10 + $0x1d8] sm:$0xf0]  ;;  %v2382_v62 = vld [vmem:[#allocation10 + $0x24] sm:$0xf]  ;;  %v2143_v14 = vor.u32 %v2416_v8, %v2140_v9  ;;  %v2396_v21 = vld [vmem:[#allocation10 + $0x94] sm:$0xf] }
  0x8c   : > { %1281 = vmatpush.bf16.msrb.mxu3 %v2195_v47  ;;  %v2223_v47 = vor.u32 %v2436_v42, %v2220_v45  ;;  %v2398_v2 = vld [vmem:[#allocation10 + $0xa4] sm:$0xf]  ;;  %v2204_v15 = vld [vmem:[#allocation10 + $0x1b8] sm:$0xf0]  ;;  %v2132_v27 = vld [vmem:[#allocation10 + $0x128] sm:$0xf0] }
  0x8d   : > { %1225 = vmatpush.bf16.msrb.mxu0 %v1995_v39  ;;  %v2087_v39 = vor.u32 %v2402_v35, %v2084_v38  ;;  %v2207_v18 = vor.u32 %v2432_v10, %v2204_v15  ;;  %v1996_v20 = vld [vmem:[#allocation10 + $0x18] sm:$0xf0]  ;;  %v2196_v31 = vld [vmem:[#allocation10 + $0x1a8] sm:$0xf0]  ;;  %v2378_v35 = vld [vmem:[#allocation10 + $0x4] sm:$0xf] }
  0x8e   : > { %1244 = vmatpush.bf16.msrb.mxu1 %v2059_v41  ;;  %v2156_v41 = vld [vmem:[#allocation10 + $0x158] sm:$0xf0]  ;;  %v2052_v42 = vld [vmem:[#allocation10 + $0x88] sm:$0xf0]  ;;  %v2428_v50 = vld [vmem:[#allocation10 + $0x194] sm:$0xf] }
  0x8f   : > { %1263 = vmatpush.bf16.msrb.mxu2 %v2123_v57  ;;  %v2159_v44 = vor.u32 %v2420_v40, %v2156_v41  ;;  %v2148_v57 = vld [vmem:[#allocation10 + $0x148] sm:$0xf0]  ;;  %v2060_v25 = vld [vmem:[#allocation10 + $0x98] sm:$0xf0]  ;;  %v2394_v41 = vld [vmem:[#allocation10 + $0x84] sm:$0xf] }
  0x90   : > { %1282 = vmatpush.bf16.msrb.mxu3 %v2187_v59  ;;  %v2151_v60 = vor.u32 %v2418_v56, %v2148_v57  ;;  %v2063_v29 = vor.u32 %v2396_v21, %v2060_v25  ;;  %v2180_v10 = vld [vmem:[#allocation10 + $0x188] sm:$0xf0]  ;;  %s474_s2 = scalar_lea.vmem [#allocation15], %s1847_s4  ;;  %s2466_s23 = sshll.u32 %s2964_s20, 5 }
  0x91   : > { %1226 = vmatpush.bf16.msrb.mxu0 %v1987_v51  ;;  %s1690_s28 = scalar_lea.hbm %s3224_s10, %s2466_s23  ;;  %s1679_s22 = scalar_lea.sflag [#allocation4], %s3081_s3 }
  0x92   : > { %1245 = vmatpush.bf16.msrb.mxu1 %v2051_v53  ;;  %v2015_v53 = vor.u32 %v2384_v48, %v2012_v49  ;;  %v2412_v48 = vld [vmem:[#allocation10 + $0x114] sm:$0xf]  ;;  %v2124_v49 = vld [vmem:[#allocation10 + $0x118] sm:$0xf0]  ;;  %s1693_s21 = sshll.u32 %s1690_s28, 4  ;;  %s2807_s18 = scalar_lea.hbm %s3224_s10, 64  ;;  %s1694_s21 = int_to_ptr.hbm [resolvable:$true] %s1693_s21 }
  0x93   : > { %1264 = vmatpush.bf16.msrb.mxu2 %v2115_v5  ;;  %v2127_v54 = vor.u32 %v2412_v48, %v2124_v49 }
  0x94   : > { %1283 = vmatpush.bf16.msrb.mxu3 %v2179_v7  ;;  %v2071_v7 = vor.u32 %v2398_v2, %v2068_v6  ;;  %v2116_v6 = vld [vmem:[#allocation10 + $0x108] sm:$0xf0] }
  0x95   : > { %1295 = vmatpush.bf16.msra.mxu0 %v2047_v63  ;;  %v3114_v63 = vstv %s3105_s0  ;;  %s1691_s0 = sshll.u32 %s474_s2, 4  ;;  %s1692_s0 = int_to_ptr.vmem [resolvable:$true] %s1691_s0 }
  0x96   : > { %1314 = vmatpush.bf16.msra.mxu1 %v2111_v1  ;;  %v2004_v1 = vld [vmem:[#allocation10 + $0x28] sm:$0xf0] }
  0x97   : > { %1333 = vmatpush.bf16.msra.mxu2 %v2175_v17  ;;  %v2007_v5 = vor.u32 %v2382_v62, %v2004_v1 }
  0x98   : > { %1352 = vmatpush.bf16.msra.mxu3 %v2239_v19  ;;  %v2380_v19 = vld [vmem:[#allocation10 + $0x14] sm:$0xf] }
  0x99   : > { %1296 = vmatpush.bf16.msra.mxu0 %v2039_v11 }
  0x9a   : > { %1315 = vmatpush.bf16.msra.mxu1 %v2103_v13 }
  0x9b   : > { %1334 = vmatpush.bf16.msra.mxu2 %v2167_v30  ;;  %v2430_v30 = vld [vmem:[#allocation10 + $0x1a4] sm:$0xf] }
  0x9c   : > { %1353 = vmatpush.bf16.msra.mxu3 %v2231_v32 }
  0x9d   : > { %1297 = vmatpush.bf16.msra.mxu0 %v2031_v24  ;;  %v1999_v24 = vor.u32 %v2380_v19, %v1996_v20 }
  0x9e   : > { %1316 = vmatpush.bf16.msra.mxu1 %v2095_v26  ;;  %v2414_v26 = vld [vmem:[#allocation10 + $0x124] sm:$0xf] }
  0x9f   : > { %1335 = vmatpush.bf16.msra.mxu2 %v2159_v44  ;;  %v2135_v40 = vor.u32 %v2414_v26, %v2132_v27 }
  0xa0   : > { %1354 = vmatpush.bf16.msra.mxu3 %v2223_v47 }
  0xa1   : > { %1298 = vmatpush.bf16.msra.mxu0 %v2023_v37  ;;  %v1988_v37 = vld [vmem:[#allocation10 + $0x8] sm:$0xf0] }
  0xa2   : > { %1317 = vmatpush.bf16.msra.mxu1 %v2087_v39  ;;  %v1991_v47 = vor.u32 %v2378_v35, %v1988_v37 }
  0xa3   : > { %1336 = vmatpush.bf16.msra.mxu2 %v2151_v60 }
  0xa4   : > { %1355 = vmatpush.bf16.msra.mxu3 %v2215_v0 }
  0xa5   : > { %1299 = vmatpush.bf16.msra.mxu0 %v2015_v53  ;;  %v2055_v53 = vor.u32 %v2394_v41, %v2052_v42 }
  0xa6   : > { %1318 = vmatpush.bf16.msra.mxu1 %v2079_v55  ;;  %v2188_v55 = vld [vmem:[#allocation10 + $0x198] sm:$0xf0] }
  0xa7   : > { %1337 = vmatpush.bf16.msra.mxu2 %v2143_v14  ;;  %v2191_v58 = vor.u32 %v2428_v50, %v2188_v55  ;;  %v2445_v55 = vld [vmem:[#allocation12 + $0x18] sm:$0xff] }
  0xa8   : > { %1356 = vmatpush.bf16.msra.mxu3 %v2207_v18 }
  0xa9   : > { %1300 = vmatpush.bf16.msra.mxu0 %v2007_v5  ;;  %v2410_v5 = vld [vmem:[#allocation10 + $0x104] sm:$0xf] }
  0xaa   : > { %1319 = vmatpush.bf16.msra.mxu1 %v2071_v7  ;;  %v2426_v7 = vld [vmem:[#allocation10 + $0x184] sm:$0xf]  ;;  %v2119_v9 = vor.u32 %v2410_v5, %v2116_v6 }
  0xab   : > { %1338 = vmatpush.bf16.msra.mxu2 %v2135_v40  ;;  %v2183_v15 = vor.u32 %v2426_v7, %v2180_v10  ;;  %v2454_v7 = vld [vmem:[#allocation12 + $0x60] sm:$0xff] }
  0xad   : > { %1301 = vmatpush.bf16.msra.mxu0 %v1999_v24 }
  0xae   : > { %1320 = vmatpush.bf16.msra.mxu1 %v2063_v29 }
  0xaf   : > { %1339 = vmatpush.bf16.msra.mxu2 %v2127_v54  ;;  %v2446_v54 = vld [vmem:[#allocation12 + $0x20] sm:$0xff] }
  0xb1   : > { %1302 = vmatpush.bf16.msra.mxu0 %v1991_v47 }
  0xb2   : > { %1321 = vmatpush.bf16.msra.mxu1 %v2055_v53  ;;  %v2449_v53 = vld [vmem:[#allocation12 + $0x38] sm:$0xff] }
  0xb3   : > { %1340 = vmatpush.bf16.msra.mxu2 %v2119_v9 }
  0xf1   : > { %v704_v46 = vpop.f32.mrf.mxu0 }
  0xf2   : > { %v705_v51 = vadd.f32 %v704_v46, %v3107_v36  ;;  %v723_v52 = vpop.f32.mrf.mxu1  ;;  %v2199_v46 = vor.u32 %v2430_v30, %v2196_v31 }
  0xf3   : > { %v724_v59 = vadd.f32 %v723_v52, %v3109_v43 }
  0xf4   : > { %vm772_vm0 = vcmp.gt.f32.partialorder %v705_v51, 0.0  ;;  %v789_v11 = vmul.f32 %v3114_v63, %v705_v51  ;;  %1357 = vmatpush.bf16.msra.mxu3 %v2199_v46 }
  0xf5   : > { %vm773_vm1 = vcmp.gt.f32.partialorder %v724_v59, 0.0  ;;  %v790_v12 = vmul.f32 %v3114_v63, %v724_v59 }
  0xf6   : > { %v805_v33 = vsel %vm772_vm0, %v705_v51, %v789_v11 }
  0xf7   : > { %v806_v34 = vsel %vm773_vm1, %v724_v59, %v790_v12 }
  0xf8   : > { %1358 = vmatpush.bf16.msra.mxu3 %v2191_v58  ;;  %v2457_v58 = vld [vmem:[#allocation12 + $0x78] sm:$0xff] }
  0xf9   : > { %v742_v13 = vpop.f32.mrf.mxu2  ;;  %v706_v17 = vpop.f32.mrf.mxu0 }
  0xfa   : > { %v761_v16 = vpop.f32.mrf.mxu3  ;;  %v707_v22 = vadd.f32 %v706_v17, %v3107_v36  ;;  %v725_v23 = vpop.f32.mrf.mxu1  ;;  %v743_v38 = vadd.f32 %v742_v13, %v3116_v3 }
  0xfb   : > { %v726_v28 = vadd.f32 %v725_v23, %v3109_v43  ;;  %v762_v44 = vadd.f32 %v761_v16, %v3118_v4 }
  0xfc   : > { %vm776_vm2 = vcmp.gt.f32.partialorder %v707_v22, 0.0  ;;  %v793_v32 = vmul.f32 %v3114_v63, %v707_v22  ;;  %vm774_vm4 = vcmp.gt.f32.partialorder %v743_v38, 0.0  ;;  %v791_v59 = vmul.f32 %v3114_v63, %v743_v38  ;;  %1359 = vmatpush.bf16.msra.mxu3 %v2183_v15 }
  0xfd   : > { %vm777_vm3 = vcmp.gt.f32.partialorder %v726_v28, 0.0  ;;  %v794_v39 = vmul.f32 %v3114_v63, %v726_v28  ;;  %v792_v0 = vmul.f32 %v3114_v63, %v762_v44  ;;  %vm775_vm5 = vcmp.gt.f32.partialorder %v762_v44, 0.0 }
  0xfe   : > { %v809_v45 = vsel %vm776_vm2, %v707_v22, %v793_v32  ;;  %v807_v13 = vsel %vm774_vm4, %v743_v38, %v791_v59 }
  0xff   : > { %v3130_v51 = vpack.c.bf16 %v809_v45, %v805_v33  ;;  %v810_v52 = vsel %vm777_vm3, %v726_v28, %v794_v39  ;;  %v808_v18 = vsel %vm775_vm5, %v762_v44, %v792_v0 }
 0x100   : > { %v3132_v57 = vpack.c.bf16 %v810_v52, %v806_v34 }
 0x101   : > { %v744_v56 = vpop.f32.mrf.mxu2  ;;  %v709_v62 = vpop.f32.mrf.mxu0  ;;  %1227 = vmatmul.bf16.vlgmr.msrb.gmra.mxu0 %v3130_v51 }
 0x102   : > { %v745_v60 = vadd.f32 %v744_v56, %v3116_v3  ;;  %v763_v61 = vpop.f32.mrf.mxu3  ;;  %v728_v2 = vpop.f32.mrf.mxu1  ;;  %1246 = vmatmul.bf16.vlgmr.msrb.gmra.mxu1 %v3132_v57  ;;  %v710_v16 = vadd.f32 %v709_v62, %v3107_v36  ;;  %1533 = vmatpush.bf16.msrb.mxu0 %v2449_v53  ;;  %v2443_v56 = vld [vmem:[#allocation12 + $0x8] sm:$0xff]  ;;  %v2456_v62 = vld [vmem:[#allocation12 + $0x70] sm:$0xff] }
 0x103   : > { %v764_v1 = vadd.f32 %v763_v61, %v3118_v4  ;;  %v729_v12 = vadd.f32 %v728_v2, %v3109_v43  ;;  %1552 = vmatpush.bf16.msrb.mxu1 %v2457_v58  ;;  %v893_v61 = vld [vmem:[%s3219_s5] sm:$0x3] }
 0x104   : > { %vm778_vm6 = vcmp.gt.f32.partialorder %v745_v60, 0.0  ;;  %v795_v8 = vmul.f32 %v3114_v63, %v745_v60  ;;  %v797_v25 = vmul.f32 %v3114_v63, %v710_v16  ;;  %vm780_vm9 = vcmp.gt.f32.partialorder %v710_v16, 0.0 }
 0x105   : > { %vm779_vm7 = vcmp.gt.f32.partialorder %v764_v1, 0.0  ;;  %v796_v11 = vmul.f32 %v3114_v63, %v764_v1  ;;  %v798_v22 = vmul.f32 %v3114_v63, %v729_v12  ;;  %vm781_vm8 = vcmp.gt.f32.partialorder %v729_v12, 0.0 }
 0x106   : > { %v811_v14 = vsel %vm778_vm6, %v745_v60, %v795_v8  ;;  %v813_v34 = vsel %vm780_vm9, %v710_v16, %v797_v25  ;;  %v895_v0 = vperm.slane %v893_v61, 0  ;;  %v2452_v16 = vld [vmem:[#allocation12 + $0x50] sm:$0xff] }
 0x107   : > { %v823_v17 = vpack.c.bf16 %v811_v14, %v807_v13  ;;  %v812_v19 = vsel %vm779_vm7, %v764_v1, %v796_v11  ;;  %v814_v32 = vsel %vm781_vm8, %v729_v12, %v798_v22  ;;  %1553 = vmatpush.bf16.msrb.mxu1 %v2456_v62  ;;  %v2455_v1 = vld [vmem:[#allocation12 + $0x68] sm:$0xff]  ;;  %v2453_v11 = vld [vmem:[#allocation12 + $0x58] sm:$0xff] }
 0x108   : > { %v824_v20 = vpack.c.bf16 %v812_v19, %v808_v18  ;;  %v3164_v19 = vstv %s2240_s24  ;;  %s2801_s24 = sshra.s32 %s1694_s21, 4  ;;  %s2802_s24 = int_to_ptr.hbm [resolvable:$true] %s2801_s24 }
 0x109   : > { %v747_v21 = vpop.f32.mrf.mxu2  ;;  %1265 = vmatmul.bf16.vlgmr.msrb.gmra.mxu2 %v823_v17  ;;  %v711_v24 = vpop.f32.mrf.mxu0  ;;  %p2808_p12 = scmp.lt.s32.totalorder %s2802_s24, %s3224_s10 }
 0x10a   : > { %v766_v23 = vpop.f32.mrf.mxu3  ;;  %1284 = vmatmul.bf16.vlgmr.msrb.gmra.mxu3 %v824_v20  ;;  %v712_v26 = vadd.f32 %v711_v24, %v3107_v36  ;;  %v730_v27 = vpop.f32.mrf.mxu1  ;;  %v748_v30 = vadd.f32 %v747_v21, %v3116_v3 }
 0x10b   : > { %v731_v28 = vadd.f32 %v730_v27, %v3109_v43  ;;  %v767_v33 = vadd.f32 %v766_v23, %v3118_v4  ;;  %2467 = vmatpush.bf16.msrb.mxu3 %v2449_v53  ;;  %1554 = vmatpush.bf16.msrb.mxu1 %v2455_v1  ;;  %v2451_v23 = vld [vmem:[#allocation12 + $0x48] sm:$0xff] }
 0x10c   : > { %v801_v29 = vmul.f32 %v3114_v63, %v712_v26  ;;  %vm784_vm10 = vcmp.gt.f32.partialorder %v712_v26, 0.0  ;;  %v799_v43 = vmul.f32 %v3114_v63, %v748_v30  ;;  %vm782_vm12 = vcmp.gt.f32.partialorder %v748_v30, 0.0 }
 0x10d   : > { %v802_v31 = vmul.f32 %v3114_v63, %v731_v28  ;;  %vm785_vm11 = vcmp.gt.f32.partialorder %v731_v28, 0.0  ;;  %v800_v42 = vmul.f32 %v3114_v63, %v767_v33  ;;  %vm783_vm14 = vcmp.gt.f32.partialorder %v767_v33, 0.0 }
 0x10e   : > { %v817_v35 = vsel %vm784_vm10, %v712_v26, %v801_v29  ;;  %v815_v47 = vsel %vm782_vm12, %v748_v30, %v799_v43  ;;  %v2450_v30 = vld [vmem:[#allocation12 + $0x40] sm:$0xff] }
 0x10f   : > { %v825_v37 = vpack.c.bf16 %v817_v35, %v813_v34  ;;  %v818_v36 = vsel %vm785_vm11, %v731_v28, %v802_v31  ;;  %v816_v50 = vsel %vm783_vm14, %v767_v33, %v800_v42  ;;  %1555 = vmatpush.bf16.msrb.mxu1 %v2454_v7 }
 0x110   : > { %v826_v39 = vpack.c.bf16 %v818_v36, %v814_v32 }
 0x111   : > { %v749_v38 = vpop.f32.mrf.mxu2  ;;  %1232 = vmatmul.bf16.gmra.mxu0 %v825_v37 }
 0x112   : > { %v750_v40 = vadd.f32 %v749_v38, %v3116_v3  ;;  %v768_v41 = vpop.f32.mrf.mxu3  ;;  %1251 = vmatmul.bf16.gmra.mxu1 %v826_v39 }
 0x113   : > { %v769_v44 = vadd.f32 %v768_v41, %v3118_v4  ;;  %v2447_v4 = vld [vmem:[#allocation12 + $0x28] sm:$0xff]  ;;  %1556 = vmatpush.bf16.msrb.mxu1 %v2453_v11 }
 0x114   : > { %v803_v45 = vmul.f32 %v3114_v63, %v750_v40  ;;  %vm786_vm13 = vcmp.gt.f32.partialorder %v750_v40, 0.0 }
 0x115   : > { %v804_v46 = vmul.f32 %v3114_v63, %v769_v44  ;;  %vm787_vm15 = vcmp.gt.f32.partialorder %v769_v44, 0.0  ;;  %v2448_v63 = vld [vmem:[#allocation12 + $0x30] sm:$0xff] }
 0x116   : > { %v819_v48 = vsel %vm786_vm13, %v750_v40, %v803_v45  ;;  %1534 = vmatpush.bf16.msrb.mxu0 %v2448_v63  ;;  %2468 = vmatpush.bf16.msrb.mxu3 %v2448_v63 }
 0x117   : > { %v827_v49 = vpack.c.bf16 %v819_v48, %v815_v47  ;;  %v820_v3 = vsel %vm787_vm15, %v769_v44, %v804_v46  ;;  %1557 = vmatpush.bf16.msrb.mxu1 %v2452_v16  ;;  %v896_v44 = vperm.slane %v893_v61, 1 }
 0x118   : > { %v828_v52 = vpack.c.bf16 %v820_v3, %v816_v50 }
 0x119   : > { %1270 = vmatmul.bf16.gmra.mxu2 %v827_v49 }
 0x11a   : > { %1289 = vmatmul.bf16.gmra.mxu3 %v828_v52  ;;  %1535 = vmatpush.bf16.msrb.mxu0 %v2447_v4 }
 0x11b   : > { %2469 = vmatpush.bf16.msrb.mxu3 %v2447_v4  ;;  %1558 = vmatpush.bf16.msrb.mxu1 %v2451_v23 }
 0x11e   : > { %1536 = vmatpush.bf16.msrb.mxu0 %v2446_v54 }
 0x11f   : > { %2470 = vmatpush.bf16.msrb.mxu3 %v2446_v54  ;;  %1559 = vmatpush.bf16.msrb.mxu1 %v2450_v30  ;;  %v2465_v30 = vld [vmem:[#allocation13 + $0x38] sm:$0xff] }
 0x120   : > { %1655 = vmatpush.bf16.msrb.mxu2 %v2465_v30 }
 0x121   : > { %1303 = vmatmul.bf16.vlgmr.msra.gmra.mxu0 %v3130_v51  ;;  %v2444_v51 = vld [vmem:[#allocation12 + $0x10] sm:$0xff] }
 0x122   : > { %1322 = vmatmul.bf16.vlgmr.msra.gmra.mxu1 %v3132_v57  ;;  %1537 = vmatpush.bf16.msrb.mxu0 %v2445_v55  ;;  %v2442_v57 = vld [vmem:[#allocation12] sm:$0xff] }
 0x123   : > { %2471 = vmatpush.bf16.msrb.mxu3 %v2445_v55 }
 0x126   : > { %1538 = vmatpush.bf16.msrb.mxu0 %v2444_v51 }
 0x127   : > { %2472 = vmatpush.bf16.msrb.mxu3 %v2444_v51 }
 0x129   : > { %1341 = vmatmul.bf16.vlgmr.msra.gmra.mxu2 %v823_v17 }
 0x12a   : > { %1360 = vmatmul.bf16.vlgmr.msra.gmra.mxu3 %v824_v20  ;;  %1539 = vmatpush.bf16.msrb.mxu0 %v2443_v56 }
 0x12b   : > { %2473 = vmatpush.bf16.msrb.mxu3 %v2443_v56 }
 0x12e   : > { %1540 = vmatpush.bf16.msrb.mxu0 %v2442_v57 }
 0x12f   : > { %2474 = vmatpush.bf16.msrb.mxu3 %v2442_v57 }
 0x131   : > { %1308 = vmatmul.bf16.gmra.mxu0 %v825_v37 }
 0x132   : > { %1327 = vmatmul.bf16.gmra.mxu1 %v826_v39 }
 0x139   : > { %1346 = vmatmul.bf16.gmra.mxu2 %v827_v49 }
 0x13a   : > { %1365 = vmatmul.bf16.gmra.mxu3 %v828_v52 }
 0x17e   : > { %v1228_v59 = vpop.f32.mrf.mxu0 }
 0x17f   : > { %v1247_v60 = vpop.f32.mrf.mxu1  ;;  %v1229_v6 = vadd.f32 %v1228_v59, %v895_v0 }
 0x181   : > { %v1248_v9 = vadd.f32 %v1247_v60, %v1229_v6 }
 0x186   : > { %v1230_v2 = vpop.f32.mrf.mxu0 }
 0x187   : > { %v1249_v5 = vpop.f32.mrf.mxu1  ;;  %v1231_v12 = vadd.f32 %v1230_v2, %v895_v0 }
 0x189   : > { %v1250_v17 = vadd.f32 %v1249_v5, %v1231_v12 }
 0x18c   : > { %v1266_v8 = vpop.f32.mrf.mxu2 }
 0x18d   : > { %v1285_v10 = vpop.f32.mrf.mxu3  ;;  %v1267_v13 = vadd.f32 %v1266_v8, %v1248_v9 }
 0x18e   : > { %v1233_v14 = vpop.f32.mrf.mxu0 }
 0x18f   : > { %v1252_v15 = vpop.f32.mrf.mxu1  ;;  %v1286_v18 = vadd.f32 %v1285_v10, %v1267_v13  ;;  %v1234_v27 = vadd.f32 %v1233_v14, %v895_v0 }
 0x191   : > { %v1381_v24 = vmul.f32 %v3164_v19, %v1286_v18  ;;  %vm1372_vm0 = vcmp.gt.f32.partialorder %v1286_v18, 0.0  ;;  %v1253_v35 = vadd.f32 %v1252_v15, %v1234_v27 }
 0x193   : > { %v1389_v31 = vsel %vm1372_vm0, %v1286_v18, %v1381_v24 }
 0x194   : > { %v1268_v20 = vpop.f32.mrf.mxu2 }
 0x195   : > { %v1269_v21 = vadd.f32 %v1268_v20, %v1250_v17  ;;  %v1287_v22 = vpop.f32.mrf.mxu3 }
 0x196   : > { %v1235_v26 = vpop.f32.mrf.mxu0 }
 0x197   : > { %v1288_v25 = vadd.f32 %v1287_v22, %v1269_v21  ;;  %v1254_v29 = vpop.f32.mrf.mxu1  ;;  %v1236_v36 = vadd.f32 %v1235_v26, %v895_v0 }
 0x199   : > { %vm1374_vm1 = vcmp.gt.f32.partialorder %v1288_v25, 0.0  ;;  %v1383_v28 = vmul.f32 %v3164_v19, %v1288_v25  ;;  %v1255_v43 = vadd.f32 %v1254_v29, %v1236_v36 }
 0x19b   : > { %v1391_v32 = vsel %vm1374_vm1, %v1288_v25, %v1383_v28 }
 0x19c   : > { %v1397_v33 = vpack.c.bf16 %v1391_v32, %v1389_v31  ;;  %v1271_v34 = vpop.f32.mrf.mxu2  ;;  %v2464_v31 = vld [vmem:[#allocation13 + $0x30] sm:$0xff]  ;;  %v2463_v32 = vld [vmem:[#allocation13 + $0x28] sm:$0xff] }
 0x19d   : > { %v1290_v37 = vpop.f32.mrf.mxu3  ;;  %v1272_v38 = vadd.f32 %v1271_v34, %v1253_v35  ;;  %1656 = vmatpush.bf16.msrb.mxu2 %v2464_v31  ;;  %v2461_v34 = vld [vmem:[#allocation13 + $0x18] sm:$0xff]  ;;  %v2460_v35 = vld [vmem:[#allocation13 + $0x10] sm:$0xff] }
 0x19e   : > { %1541 = vmatmul.bf16.vlgmr.msrb.gmra.mxu0 %v1397_v33  ;;  %v1304_v39 = vpop.f32.mrf.mxu0  ;;  %v2462_v33 = vld [vmem:[#allocation13 + $0x20] sm:$0xff] }
 0x19f   : > { %v1291_v40 = vadd.f32 %v1290_v37, %v1272_v38  ;;  %v1323_v41 = vpop.f32.mrf.mxu1  ;;  %v1305_v50 = vadd.f32 %v1304_v39, %v896_v44  ;;  %v2459_v37 = vld [vmem:[#allocation13 + $0x8] sm:$0xff]  ;;  %v2590_v38 = vld [vmem:[%s3221_s7] ss:$0 sm:$0xff] }
 0x1a1   : > { %v1385_v47 = vmul.f32 %v3164_v19, %v1291_v40  ;;  %vm1376_vm2 = vcmp.gt.f32.partialorder %v1291_v40, 0.0  ;;  %v1324_v54 = vadd.f32 %v1323_v41, %v1305_v50  ;;  %1657 = vmatpush.bf16.msrb.mxu2 %v2463_v32 }
 0x1a3   : > { %v1393_v52 = vsel %vm1376_vm2, %v1291_v40, %v1385_v47 }
 0x1a4   : > { %v1273_v42 = vpop.f32.mrf.mxu2 }
 0x1a5   : > { %v1274_v45 = vadd.f32 %v1273_v42, %v1255_v43  ;;  %v1292_v46 = vpop.f32.mrf.mxu3  ;;  %1658 = vmatpush.bf16.msrb.mxu2 %v2462_v33  ;;  %v1576_v42 = vstv %s2305_s26  ;;  %s2803_s26 = scalar_lea.hbm %s2802_s24, 32 }
 0x1a6   : > { %v1306_v49 = vpop.f32.mrf.mxu0  ;;  %p2804_p1 = scmp.ne.s32.totalorder %s2802_s24, %s2803_s26  ;;  %p2809_p7 = scmp.lt.s32.totalorder %s2807_s18, %s2803_s26 }
 0x1a7   : > { %v1293_v48 = vadd.f32 %v1292_v46, %v1274_v45  ;;  %v1325_v51 = vpop.f32.mrf.mxu1  ;;  %v1307_v56 = vadd.f32 %v1306_v49, %v896_v44 }
 0x1a8   : > { %p2805_p3 = pnand %p2804_p1, %p3043_p4  ;;  %p2810_p8 = por %p2809_p7, %p2808_p12 }
 0x1a9   : > { %vm1378_vm3 = vcmp.gt.f32.partialorder %v1293_v48, 0.0  ;;  %v1387_v3 = vmul.f32 %v3164_v19, %v1293_v48  ;;  %v1326_v59 = vadd.f32 %v1325_v51, %v1307_v56  ;;  %1659 = vmatpush.bf16.msrb.mxu2 %v2461_v34 }
 0x1aa   : > { %p2806_p5 = pneg %p2805_p3 }
 0x1ab   : > { %v1395_v53 = vsel %vm1378_vm3, %v1293_v48, %v1387_v3 }
 0x1ac   : > { %v1399_v63 = vpack.c.bf16 %v1395_v53, %v1393_v52  ;;  %v1342_v4 = vpop.f32.mrf.mxu2  ;;  %p2811_p9 = pnand %p2810_p8, %p2806_p5 }
 0x1ad   : > { %v1361_v55 = vpop.f32.mrf.mxu3  ;;  %v1343_v57 = vadd.f32 %v1342_v4, %v1324_v54  ;;  %1660 = vmatpush.bf16.msrb.mxu2 %v2460_v35 }
 0x1ae   : > { %1546 = vmatmul.bf16.vlgmr.msrb.gmra.mxu3 %v1399_v63  ;;  %v1309_v58 = vpop.f32.mrf.mxu0 }
 0x1af   : > { %v1362_v60 = vadd.f32 %v1361_v55, %v1343_v57  ;;  %v1328_v5 = vpop.f32.mrf.mxu1  ;;  %v1310_v6 = vadd.f32 %v1309_v58, %v896_v44 }
 0x1b1   : > { %v1382_v1 = vmul.f32 %v3164_v19, %v1362_v60  ;;  %vm1373_vm4 = vcmp.gt.f32.partialorder %v1362_v60, 0.0  ;;  %v1329_v13 = vadd.f32 %v1328_v5, %v1310_v6  ;;  %1661 = vmatpush.bf16.msrb.mxu2 %v2459_v37 }
 0x1b3   : > { %v1390_v8 = vsel %vm1373_vm4, %v1362_v60, %v1382_v1 }
 0x1b4   : > { %v1344_v61 = vpop.f32.mrf.mxu2 }
 0x1b5   : > { %v1345_v62 = vadd.f32 %v1344_v61, %v1326_v59  ;;  %v1363_v0 = vpop.f32.mrf.mxu3 }
 0x1b6   : > { %v1311_v11 = vpop.f32.mrf.mxu0 }
 0x1b7   : > { %v1364_v2 = vadd.f32 %v1363_v0, %v1345_v62  ;;  %v1312_v15 = vadd.f32 %v1311_v11, %v896_v44  ;;  %v1330_v17 = vpop.f32.mrf.mxu1  ;;  %v2591_v62 = vld [vmem:[%s3223_s9] ss:$0 sm:$0xff] }
 0x1b9   : > { %vm1375_vm5 = vcmp.gt.f32.partialorder %v1364_v2, 0.0  ;;  %v1384_v7 = vmul.f32 %v3164_v19, %v1364_v2  ;;  %v1331_v18 = vadd.f32 %v1330_v17, %v1312_v15 }
 0x1bb   : > { %v1392_v9 = vsel %vm1375_vm5, %v1364_v2, %v1384_v7 }
 0x1bc   : > { %v1398_v10 = vpack.c.bf16 %v1392_v9, %v1390_v8  ;;  %v1347_v12 = vpop.f32.mrf.mxu2 }
 0x1bd   : > { %v1366_v14 = vpop.f32.mrf.mxu3  ;;  %v1348_v16 = vadd.f32 %v1347_v12, %v1329_v13 }
 0x1be   : > { %1560 = vmatmul.bf16.vlgmr.msrb.gmra.mxu1 %v1398_v10 }
 0x1bf   : > { %v1367_v20 = vadd.f32 %v1366_v14, %v1348_v16 }
 0x1c1   : > { %v1386_v24 = vmul.f32 %v3164_v19, %v1367_v20  ;;  %vm1377_vm6 = vcmp.gt.f32.partialorder %v1367_v20, 0.0 }
 0x1c3   : > { %v1394_v27 = vsel %vm1377_vm6, %v1367_v20, %v1386_v24 }
 0x1c4   : > { %v1349_v21 = vpop.f32.mrf.mxu2 }
 0x1c5   : > { %v1350_v22 = vadd.f32 %v1349_v21, %v1331_v18  ;;  %v1368_v23 = vpop.f32.mrf.mxu3 }
 0x1c7   : > { %v1369_v25 = vadd.f32 %v1368_v23, %v1350_v22 }
 0x1c9   : > { %v1388_v26 = vmul.f32 %v3164_v19, %v1369_v25  ;;  %vm1379_vm7 = vcmp.gt.f32.partialorder %v1369_v25, 0.0  ;;  %v2458_v19 = vld [vmem:[#allocation13] sm:$0xff] }
 0x1ca   : > { %1662 = vmatpush.bf16.msrb.mxu2 %v2458_v19 }
 0x1cb   : > { %v1396_v28 = vsel %vm1379_vm7, %v1369_v25, %v1388_v26 }
 0x1cc   : > { %v1400_v29 = vpack.c.bf16 %v1396_v28, %v1394_v27 }
 0x1ce   : > { %1565 = vmatmul.bf16.gmra.mxu1 %v1400_v29 }
 0x21b   : > { %v1542_v36 = vpop.f32.mrf.mxu0 }
 0x21c   : > { %v1543_v43 = vadd.f32 %v2590_v38, %v1542_v36 }
 0x223   : > { %v1544_v40 = vpop.f32.mrf.mxu0 }
 0x224   : > { %v1545_v44 = vadd.f32 %v2590_v38, %v1544_v40 }
 0x231   : > { %v1547_v48 = vpop.f32.mrf.mxu3 }
 0x232   : > { %v1548_v63 = vadd.f32 %v2590_v38, %v1547_v48 }
 0x239   : > { %v1549_v4 = vpop.f32.mrf.mxu3 }
 0x23a   : > { %v1550_v55 = vadd.f32 %v2590_v38, %v1549_v4 }
 0x23b   : > { %v1561_v39 = vpop.f32.mrf.mxu1 }
 0x23c   : > { %v1562_v41 = vadd.f32 %v1561_v39, %v1543_v43 }
 0x23e   : > { %v1577_v46 = vmul.f32 %v1576_v42, %v1562_v41  ;;  %vm1572_vm8 = vcmp.gt.f32.partialorder %v1562_v41, 0.0 }
 0x240   : > { %v1581_v50 = vsel %vm1572_vm8, %v1562_v41, %v1577_v46 }
 0x243   : > { %v1563_v45 = vpop.f32.mrf.mxu1 }
 0x244   : > { %v1564_v47 = vadd.f32 %v1563_v45, %v1545_v44 }
 0x246   : > { %vm1573_vm9 = vcmp.gt.f32.partialorder %v1564_v47, 0.0  ;;  %v1578_v49 = vmul.f32 %v1576_v42, %v1564_v47 }
 0x248   : > { %v1582_v3 = vsel %vm1573_vm9, %v1564_v47, %v1578_v49 }
 0x249   : > { %v1585_v52 = vpack.c.bf16 %v1582_v3, %v1581_v50 }
 0x24b   : > { %v1566_v53 = vpop.f32.mrf.mxu1  ;;  %1663 = vmatmul.bf16.vlgmr.msrb.gmra.mxu2 %v1585_v52 }
 0x24c   : > { %v1567_v54 = vadd.f32 %v1566_v53, %v1548_v63 }
 0x24e   : > { %v1579_v56 = vmul.f32 %v1576_v42, %v1567_v54  ;;  %vm1574_vm10 = vcmp.gt.f32.partialorder %v1567_v54, 0.0 }
 0x250   : > { %v1583_v59 = vsel %vm1574_vm10, %v1567_v54, %v1579_v56 }
 0x253   : > { %v1568_v51 = vpop.f32.mrf.mxu1 }
 0x254   : > { %v1569_v57 = vadd.f32 %v1568_v51, %v1550_v55 }
 0x256   : > { %v1580_v58 = vmul.f32 %v1576_v42, %v1569_v57  ;;  %vm1575_vm11 = vcmp.gt.f32.partialorder %v1569_v57, 0.0 }
 0x258   : > { %v1584_v60 = vsel %vm1575_vm11, %v1569_v57, %v1580_v58 }
 0x259   : > { %v1586_v61 = vpack.c.bf16 %v1584_v60, %v1583_v59 }
 0x25b   : > { %1668 = vmatmul.bf16.gmra.mxu2 %v1586_v61 }
 0x2ce   : > { %v1664_v0 = vpop.f32.mrf.mxu2 }
 0x2cf   : > { %v1665_v1 = vadd.f32 %v2591_v62, %v1664_v0 }
 0x2d1   : > { %1674 = vst [vmem:[%s474_s2] sm:$0xff] %v1665_v1 }
 0x2d6   : > { %v1666_v2 = vpop.f32.mrf.mxu2 }
 0x2d7   : > { %v1667_v5 = vadd.f32 %v2591_v62, %v1666_v2 }
 0x2d9   : > { %1675 = vst [vmem:[%s474_s2 + $0x8] sm:$0xff] %v1667_v5 }
 0x2de   : > { %v1669_v6 = vpop.f32.mrf.mxu2 }
 0x2df   : > { %v1670_v7 = vadd.f32 %v2591_v62, %v1669_v6 }
 0x2e1   : > { %1676 = vst [vmem:[%s474_s2 + $0x10] sm:$0xff] %v1670_v7 }
 0x2e6   : > { %v1671_v8 = vpop.f32.mrf.mxu2 }
 0x2e7   : > { %v1672_v9 = vadd.f32 %v2591_v62, %v1671_v8 }
 0x2e9   : > { %1677 = vst [vmem:[%s474_s2 + $0x18] sm:$0xff] %v1672_v9 }
 0x2ea   : > { %2814 = shalt.err (!%p2811_p9)
}
 0x2eb   : > { %s2883_s3 = smov 128   ;;  %s2884_s27 = smov 8  }
 0x2ec   : > { %2501 = dma.vmem_to_hbm [thread:$0]  (%p3043_p4), %s1692_s0, 512, %s1694_s21, %s1679_s22, %s2883_s3, %s2883_s3, %s2884_s27  }
 0x2ed PF: > { %s1708_s2 = sand.u32 1, %s2857_s13   ;;  %p3246_p10 = scmp.ge.s32.totalorder %s2869_s16, 2 }
 0x2ee   : > { %s1709_s23 = scalar_lea.sflag [#allocation4], %s1708_s2 }
 0x2ef   : > { %p2527_p13 = pnand %p3246_p10, %p3047_p6 }
 0x2f1   : > { %p2528_p11 = pneg %p2527_p13 }
 0x2f3   : > { %2852 = dma.done.wait (%p2528_p11), %s1709_s23, 512  }
 0x2f4   : > { %2854 = vsyncadd (%p2528_p11), %s1709_s23, 4294966784  ;;  %p27_p0 = scmp.ge.s32.totalorder %s3017_s19, 4   ;;  %s3247_s13 = smov %s2861_s14 }
 0x2f5   : > { %s3248_s14 = smov %s2865_s15  ;;  %s3249_s15 = smov %s3028_s11 }
 0x2f6   : > { %s3250_s16 = smov %s3017_s19  ;;  %29 = sbr.rel (!%p27_p0) target bundleno = 15 (0xf), region = 130 }
 0x2fb   :  { %1715 = vsyncpa [#allocation3], 1 }
 0x2fc   :  { %1717 = vsyncpa [#allocation3 + $0x1], 1 }
 0x2fd   :  { %1718 = vsyncpa [#allocation8], 1 }
 0x2fe   :  { %1719 = vsyncpa [#allocation11], 1 }
 0x2ff   :  { %1720 = vsyncpa [#allocation14], 1 }
 0x300   :  { %1721 = vsyncpa [#allocation4], 1 }
 0x301   :  { %1723 = vsyncpa [#allocation4 + $0x1], 1 }
 0x302   :  { %1724 = vsyncpa [#allocation5], 1 }
 0x303   :  { %1726 = vsyncpa [#allocation5 + $0x1], 1 }

</bundles_post_ra>
